<compile_context>
chip_gen: v5e
topology: v5e:2x2
jax: 0.10.0
libtpu: 0.0.40
codegen_flags: <defaults>
</compile_context>

<pallas_src>
import functools

import jax
import jax.numpy as jnp
from jax import lax
from jax.experimental import pallas as pl
from jax.experimental.pallas import tpu as pltpu


def _round_up(x: int, m: int) -> int:
    return ((x + m - 1) // m) * m


# ---------------------------------------------------------------- kernels ---

def _xw_kernel(x_ref, w_ref, o_ref):
    # Y[i] = X[i] @ W1   (row-tiled; W1 resident via constant index_map)
    o_ref[...] = jnp.dot(
        x_ref[...], w_ref[...], preferred_element_type=jnp.float32
    ).astype(o_ref.dtype)


def _agg_act_proj_kernel(a_ref, y_ref, w2_ref, o_ref, acc_ref):
    # acc[i] = sum_k A[i, k] @ Y[k];  Z[i] = LeakyReLU(acc[i]) @ W2
    k = pl.program_id(1)

    @pl.when(k == 0)
    def _():
        acc_ref[...] = jnp.zeros_like(acc_ref)

    acc_ref[...] += jnp.dot(
        a_ref[...], y_ref[...], preferred_element_type=jnp.float32
    )

    @pl.when(k == pl.num_programs(1) - 1)
    def _():
        h = acc_ref[...]
        h = jnp.maximum(h, 0.01 * h)  # LeakyReLU, default negative_slope=0.01
        o_ref[...] = jnp.dot(
            h, w2_ref[...], preferred_element_type=jnp.float32
        ).astype(o_ref.dtype)


def _agg_norm_kernel(a_ref, z_ref, o_ref, acc_ref):
    # acc[i] = sum_k A[i, k] @ Z[k];  out[i] = l2_normalize_rows(acc[i])
    k = pl.program_id(1)

    @pl.when(k == 0)
    def _():
        acc_ref[...] = jnp.zeros_like(acc_ref)

    acc_ref[...] += jnp.dot(
        a_ref[...], z_ref[...], preferred_element_type=jnp.float32
    )

    @pl.when(k == pl.num_programs(1) - 1)
    def _():
        h = acc_ref[...]
        # Row-wise L2 normalization; no epsilon, matching the PyTorch module.
        inv = lax.rsqrt(jnp.sum(h * h, axis=1, keepdims=True))
        o_ref[...] = (h * inv).astype(o_ref.dtype)


# ---------------------------------------------------------------- wrapper ---

@functools.partial(jax.jit, static_argnames=("use_bf16",))
def mymodel_forward(a_hat, x, w1, w2, use_bf16: bool = True):
    n, in_f = x.shape
    hid_f = w1.shape[1]   # 256 in the module -- already a multiple of 128
    out_f = w2.shape[1]   # 128 in the module -- already a multiple of 128

    # --- padding / tiling choices ------------------------------------------
    in_pad = _round_up(in_f, 128)          # 300 -> 384: clean MXU K cadence
    n_pad = _round_up(n, 256)              # node dim, (8,128)-aligned tiles
    tm = 128 if n_pad == 256 else 256      # >= 2 row tiles (v7x has 2 TCs)
    tk = 512 if n_pad % 512 == 0 else 256  # contraction tile over nodes

    agg_dtype = jnp.bfloat16 if use_bf16 else jnp.float32
    esz = 2 if use_bf16 else 4

    x_p = jnp.pad(x, ((0, n_pad - n), (0, in_pad - in_f)))
    w1_p = jnp.pad(w1, ((0, in_pad - in_f), (0, 0)))
    a_p = jnp.pad(a_hat, ((0, n_pad - n), (0, n_pad - n))).astype(agg_dtype)

    row_grid = (n_pad // tm,)
    agg_grid = (n_pad // tm, n_pad // tk)

    # ---- stage 1: Y = X @ W1 -----------------------------------------------
    y = pl.pallas_call(
        _xw_kernel,
        out_shape=jax.ShapeDtypeStruct((n_pad, hid_f), agg_dtype),
        grid=row_grid,
        in_specs=[
            pl.BlockSpec((tm, in_pad), lambda i: (i, 0)),
            pl.BlockSpec((in_pad, hid_f), lambda i: (0, 0)),
        ],
        out_specs=pl.BlockSpec((tm, hid_f), lambda i: (i, 0)),
        compiler_params=pltpu.CompilerParams(
            dimension_semantics=("parallel",)),
        cost_estimate=pl.CostEstimate(
            flops=2 * n_pad * in_pad * hid_f,
            transcendentals=0,
            bytes_accessed=4 * (n_pad * in_pad + in_pad * hid_f)
            + esz * n_pad * hid_f,
        ),
    )(x_p, w1_p)

    # ---- stage 2: Z = LeakyReLU(A @ Y) @ W2 (K-tiled over nodes) ------------
    z = pl.pallas_call(
        _agg_act_proj_kernel,
        out_shape=jax.ShapeDtypeStruct((n_pad, out_f), agg_dtype),
        grid=agg_grid,
        in_specs=[
            pl.BlockSpec((tm, tk), lambda i, k: (i, k)),
            pl.BlockSpec((tk, hid_f), lambda i, k: (k, 0)),
            pl.BlockSpec((hid_f, out_f), lambda i, k: (0, 0)),
        ],
        out_specs=pl.BlockSpec((tm, out_f), lambda i, k: (i, 0)),
        scratch_shapes=[pltpu.VMEM((tm, hid_f), jnp.float32)],
        compiler_params=pltpu.CompilerParams(
            dimension_semantics=("parallel", "arbitrary")),
        cost_estimate=pl.CostEstimate(
            flops=2 * n_pad * n_pad * hid_f + 2 * n_pad * hid_f * out_f,
            transcendentals=0,
            bytes_accessed=esz * (n_pad * n_pad
                                  + (n_pad // tm) * n_pad * hid_f
                                  + n_pad * out_f)
            + 4 * hid_f * out_f,
        ),
    )(a_p, y, w2)

    # ---- stage 3: out = l2_normalize_rows(A @ Z) (K-tiled over nodes) -------
    out = pl.pallas_call(
        _agg_norm_kernel,
        out_shape=jax.ShapeDtypeStruct((n_pad, out_f), jnp.float32),
        grid=agg_grid,
        in_specs=[
            pl.BlockSpec((tm, tk), lambda i, k: (i, k)),
            pl.BlockSpec((tk, out_f), lambda i, k: (k, 0)),
        ],
        out_specs=pl.BlockSpec((tm, out_f), lambda i, k: (i, 0)),
        scratch_shapes=[pltpu.VMEM((tm, out_f), jnp.float32)],
        compiler_params=pltpu.CompilerParams(
            dimension_semantics=("parallel", "arbitrary")),
        cost_estimate=pl.CostEstimate(
            flops=2 * n_pad * n_pad * out_f + 3 * n_pad * out_f,
            transcendentals=n_pad,
            bytes_accessed=esz * (n_pad * n_pad
                                  + (n_pad // tm) * n_pad * out_f)
            + 4 * n_pad * out_f,
        ),
    )(a_p, z)

    # Crop away padded (all-zero) rows.  Padded rows would contain NaN from the
    # eps-free L2 norm (0/0), exactly as the PyTorch reference would; they never
    # mix with real rows (the norm is purely row-wise) and are discarded here.
    return out[:n]


# -------------------------------------------------------------- reference ---

def reference_forward(a_hat, x, w1, w2):
    h = (a_hat @ x) @ w1
    h = jnp.where(h >= 0, h, 0.01 * h)
    h = (a_hat @ h) @ w2
    l2 = jnp.sqrt(jnp.sum(h * h, axis=1, keepdims=True))
    return h / l2


if __name__ == "__main__":
    key = jax.random.PRNGKey(0)
    k_graph, k_x, k_w1, k_w2 = jax.random.split(key, 4)

    # Small node count; feature dims fixed by the module (300 -> 256 -> 128).
    N, IN_F, HID_F, OUT_F = 16, 300, 256, 128

    # Deterministic symmetric normalized adjacency A_hat = D^-1/2 (A + I) D^-1/2
    adj = (jax.random.uniform(k_graph, (N, N)) > 0.7).astype(jnp.float32)
    adj = jnp.maximum(adj, adj.T) + jnp.eye(N, dtype=jnp.float32)
    deg_inv_sqrt = 1.0 / jnp.sqrt(jnp.sum(adj, axis=1))
    a_hat = adj * deg_inv_sqrt[:, None] * deg_inv_sqrt[None, :]

    # Input semantic matrix (N, 300)
    x = jax.random.normal(k_x, (N, IN_F), dtype=jnp.float32)

    # Weights: uniform(-0.001, 0.001) as in init_weights; bias=0 unused in forward.
    w1 = jax.random.uniform(k_w1, (IN_F, HID_F), minval=-0.001, maxval=0.001,
                            dtype=jnp.float32)
    w2 = jax.random.uniform(k_w2, (HID_F, OUT_F), minval=-0.001, maxval=0.001,
                            dtype=jnp.float32)

    ref = reference_forward(a_hat, x, w1, w2)

    # Exact f32 path: matches the PyTorch forward semantics to tight tolerance.
    out_f32 = jax.block_until_ready(
        mymodel_forward(a_hat, x, w1, w2, use_bf16=False))
    assert out_f32.shape == (N, OUT_F), out_f32.shape
    assert jnp.allclose(out_f32, ref, atol=1e-5, rtol=1e-5), "f32 mismatch"

    # Fast path (default): bf16 A/Y/Z with f32 accumulation; tolerance loosened
    # deliberately (bf16 mantissa ~3 decimal digits; output is L2-normalized).
    out = jax.block_until_ready(mymodel_forward(a_hat, x, w1, w2))
    assert out.shape == (N, OUT_F), out.shape
    assert jnp.allclose(out, ref, atol=2e-2, rtol=2e-2), "bf16 mismatch"

    print("KERNEL_OK")
</pallas_src>

<mosaic_0001>
module attributes {stable_mosaic.version = 11 : i64} {
  func.func @_xw_kernel(%arg0: i32, %arg1: memref<128x384xf32, #tpu.memory_space<vmem>>, %arg2: memref<384x256xf32, #tpu.memory_space<vmem>>, %arg3: memref<128x256xf32, #tpu.memory_space<vmem>>) attributes {dimension_semantics = [#tpu.dimension_semantics<parallel>], iteration_bounds = array<i64: 2>, scalar_prefetch = 0 : i64, scratch_operands = 0 : i64, tpu.core_type = #tpu.core_type<tc>, window_params = [{transform_indices = @transform_0, window_bounds = array<i64: 128, 384>}, {pipeline_mode = #tpu.pipeline_mode<synchronous>, transform_indices = @transform_1, window_bounds = array<i64: 384, 256>}, {transform_indices = @transform_2, window_bounds = array<i64: 128, 256>}]} {
    %c0 = arith.constant 0 : index
    %c0_0 = arith.constant 0 : index
    %0 = vector.load %arg1[%c0, %c0_0] : memref<128x384xf32, #tpu.memory_space<vmem>>, vector<128x384xf32>
    %c0_1 = arith.constant 0 : index
    %c0_2 = arith.constant 0 : index
    %1 = vector.load %arg2[%c0_1, %c0_2] : memref<384x256xf32, #tpu.memory_space<vmem>>, vector<384x256xf32>
    %cst = arith.constant dense<0.000000e+00> : vector<128x256xf32>
    %2 = tpu.matmul %0, %1, %cst {dimension_numbers = #tpu.dot_dimension_numbers<[1], [0], [0], [1], [0, 0, 1, 1], [], []>} : vector<128x384xf32>, vector<384x256xf32>, vector<128x256xf32> -> vector<128x256xf32>
    %c0_3 = arith.constant 0 : index
    %c0_4 = arith.constant 0 : index
    %3 = vector.load %arg3[%c0_3, %c0_4] : memref<128x256xf32, #tpu.memory_space<vmem>>, vector<128x256xf32>
    tpu.vector_store %arg3[%c0_3, %c0_4], %2 {strides = array<i32>} : memref<128x256xf32, #tpu.memory_space<vmem>>, vector<128x256xf32>,
    return
  }
  func.func @transform_0(%arg0: i32) -> (i32, i32) {
    %c0_i32 = arith.constant 0 : i32
    %c0_i32_0 = arith.constant 0 : i32
    return %arg0, %c0_i32 : i32, i32
  }
  func.func @transform_1(%arg0: i32) -> (i32, i32) {
    %c0_i32 = arith.constant 0 : i32
    %c0_i32_0 = arith.constant 0 : i32
    %c0_i32_1 = arith.constant 0 : i32
    return %c0_i32, %c0_i32_0 : i32, i32
  }
  func.func @transform_2(%arg0: i32) -> (i32, i32) {
    %c0_i32 = arith.constant 0 : i32
    %c0_i32_0 = arith.constant 0 : i32
    return %arg0, %c0_i32 : i32, i32
  }
}

module attributes {stable_mosaic.version = 11 : i64} {
  func.func @_agg_act_proj_kernel(%arg0: i32, %arg1: i32, %arg2: memref<128x256xf32, #tpu.memory_space<vmem>>, %arg3: memref<256x256xf32, #tpu.memory_space<vmem>>, %arg4: memref<256x128xf32, #tpu.memory_space<vmem>>, %arg5: memref<128x128xf32, #tpu.memory_space<vmem>>, %arg6: memref<128x256xf32, #tpu.memory_space<vmem>>) attributes {dimension_semantics = [#tpu.dimension_semantics<parallel>, #tpu.dimension_semantics<arbitrary>], iteration_bounds = array<i64: 2, 1>, scalar_prefetch = 0 : i64, scratch_operands = 1 : i64, tpu.core_type = #tpu.core_type<tc>, window_params = [{transform_indices = @transform_0, window_bounds = array<i64: 128, 256>}, {transform_indices = @transform_1, window_bounds = array<i64: 256, 256>}, {pipeline_mode = #tpu.pipeline_mode<synchronous>, transform_indices = @transform_2, window_bounds = array<i64: 256, 128>}, {transform_indices = @transform_3, window_bounds = array<i64: 128, 128>}]} {
    %c0_i32 = arith.constant 0 : i32
    %0 = arith.cmpi eq, %arg1, %c0_i32 : i32
    %1 = arith.extui %0 : i1 to i32
    %c0_i32_0 = arith.constant 0 : i32
    %2 = arith.cmpi ne, %1, %c0_i32_0 : i32
    scf.if %2 {
      %cst_10 = arith.constant 0.000000e+00 : f32
      %12 = vector.broadcast %cst_10 : f32 to vector<128x256xf32>
      %c0_11 = arith.constant 0 : index
      %c0_12 = arith.constant 0 : index
      %13 = vector.load %arg6[%c0_11, %c0_12] : memref<128x256xf32, #tpu.memory_space<vmem>>, vector<128x256xf32>
      tpu.vector_store %arg6[%c0_11, %c0_12], %12 {strides = array<i32>} : memref<128x256xf32, #tpu.memory_space<vmem>>, vector<128x256xf32>,
    } else {
    }
    %c0 = arith.constant 0 : index
    %c0_1 = arith.constant 0 : index
    %3 = vector.load %arg6[%c0, %c0_1] : memref<128x256xf32, #tpu.memory_space<vmem>>, vector<128x256xf32>
    %c0_2 = arith.constant 0 : index
    %c0_3 = arith.constant 0 : index
    %4 = vector.load %arg2[%c0_2, %c0_3] : memref<128x256xf32, #tpu.memory_space<vmem>>, vector<128x256xf32>
    %c0_4 = arith.constant 0 : index
    %c0_5 = arith.constant 0 : index
    %5 = vector.load %arg3[%c0_4, %c0_5] : memref<256x256xf32, #tpu.memory_space<vmem>>, vector<256x256xf32>
    %cst = arith.constant dense<0.000000e+00> : vector<128x256xf32>
    %6 = tpu.matmul %4, %5, %cst {dimension_numbers = #tpu.dot_dimension_numbers<[1], [0], [0], [1], [0, 0, 1, 1], [], []>} : vector<128x256xf32>, vector<256x256xf32>, vector<128x256xf32> -> vector<128x256xf32>
    %7 = arith.addf %3, %6 : vector<128x256xf32>
    %c0_6 = arith.constant 0 : index
    %c0_7 = arith.constant 0 : index
    %8 = vector.load %arg6[%c0_6, %c0_7] : memref<128x256xf32, #tpu.memory_space<vmem>>, vector<128x256xf32>
    tpu.vector_store %arg6[%c0_6, %c0_7], %7 {strides = array<i32>} : memref<128x256xf32, #tpu.memory_space<vmem>>, vector<128x256xf32>,
    %c0_i32_8 = arith.constant 0 : i32
    %9 = arith.cmpi eq, %arg1, %c0_i32_8 : i32
    %10 = arith.extui %9 : i1 to i32
    %c0_i32_9 = arith.constant 0 : i32
    %11 = arith.cmpi ne, %10, %c0_i32_9 : i32
    scf.if %11 {
      %c0_10 = arith.constant 0 : index
      %c0_11 = arith.constant 0 : index
      %12 = vector.load %arg6[%c0_10, %c0_11] : memref<128x256xf32, #tpu.memory_space<vmem>>, vector<128x256xf32>
      %cst_12 = arith.constant 0.00999999977 : f32
      %13 = vector.broadcast %cst_12 : f32 to vector<128x256xf32>
      %14 = arith.mulf %13, %12 : vector<128x256xf32>
      %15 = arith.maximumf %12, %14 : vector<128x256xf32>
      %c0_13 = arith.constant 0 : index
      %c0_14 = arith.constant 0 : index
      %16 = vector.load %arg4[%c0_13, %c0_14] : memref<256x128xf32, #tpu.memory_space<vmem>>, vector<256x128xf32>
      %cst_15 = arith.constant dense<0.000000e+00> : vector<128x128xf32>
      %17 = tpu.matmul %15, %16, %cst_15 {dimension_numbers = #tpu.dot_dimension_numbers<[1], [0], [0], [1], [0, 0, 1, 1], [], []>} : vector<128x256xf32>, vector<256x128xf32>, vector<128x128xf32> -> vector<128x128xf32>
      %c0_16 = arith.constant 0 : index
      %c0_17 = arith.constant 0 : index
      %18 = vector.load %arg5[%c0_16, %c0_17] : memref<128x128xf32, #tpu.memory_space<vmem>>, vector<128x128xf32>
      tpu.vector_store %arg5[%c0_16, %c0_17], %17 {strides = array<i32>} : memref<128x128xf32, #tpu.memory_space<vmem>>, vector<128x128xf32>,
    } else {
    }
    return
  }
  func.func @transform_0(%arg0: i32, %arg1: i32) -> (i32, i32) {
    %c0_i32 = arith.constant 0 : i32
    return %arg0, %arg1 : i32, i32
  }
  func.func @transform_1(%arg0: i32, %arg1: i32) -> (i32, i32) {
    %c0_i32 = arith.constant 0 : i32
    %c0_i32_0 = arith.constant 0 : i32
    return %arg1, %c0_i32 : i32, i32
  }
  func.func @transform_2(%arg0: i32, %arg1: i32) -> (i32, i32) {
    %c0_i32 = arith.constant 0 : i32
    %c0_i32_0 = arith.constant 0 : i32
    %c0_i32_1 = arith.constant 0 : i32
    return %c0_i32, %c0_i32_0 : i32, i32
  }
  func.func @transform_3(%arg0: i32, %arg1: i32) -> (i32, i32) {
    %c0_i32 = arith.constant 0 : i32
    %c0_i32_0 = arith.constant 0 : i32
    return %arg0, %c0_i32 : i32, i32
  }
}

module attributes {stable_mosaic.version = 11 : i64} {
  func.func @_agg_norm_kernel(%arg0: i32, %arg1: i32, %arg2: memref<128x256xf32, #tpu.memory_space<vmem>>, %arg3: memref<256x128xf32, #tpu.memory_space<vmem>>, %arg4: memref<128x128xf32, #tpu.memory_space<vmem>>, %arg5: memref<128x128xf32, #tpu.memory_space<vmem>>) attributes {dimension_semantics = [#tpu.dimension_semantics<parallel>, #tpu.dimension_semantics<arbitrary>], iteration_bounds = array<i64: 2, 1>, scalar_prefetch = 0 : i64, scratch_operands = 1 : i64, tpu.core_type = #tpu.core_type<tc>, window_params = [{transform_indices = @transform_0, window_bounds = array<i64: 128, 256>}, {transform_indices = @transform_1, window_bounds = array<i64: 256, 128>}, {transform_indices = @transform_2, window_bounds = array<i64: 128, 128>}]} {
    %c0_i32 = arith.constant 0 : i32
    %0 = arith.cmpi eq, %arg1, %c0_i32 : i32
    %1 = arith.extui %0 : i1 to i32
    %c0_i32_0 = arith.constant 0 : i32
    %2 = arith.cmpi ne, %1, %c0_i32_0 : i32
    scf.if %2 {
      %cst_10 = arith.constant 0.000000e+00 : f32
      %12 = vector.broadcast %cst_10 : f32 to vector<128x128xf32>
      %c0_11 = arith.constant 0 : index
      %c0_12 = arith.constant 0 : index
      %13 = vector.load %arg5[%c0_11, %c0_12] : memref<128x128xf32, #tpu.memory_space<vmem>>, vector<128x128xf32>
      tpu.vector_store %arg5[%c0_11, %c0_12], %12 {strides = array<i32>} : memref<128x128xf32, #tpu.memory_space<vmem>>, vector<128x128xf32>,
    } else {
    }
    %c0 = arith.constant 0 : index
    %c0_1 = arith.constant 0 : index
    %3 = vector.load %arg5[%c0, %c0_1] : memref<128x128xf32, #tpu.memory_space<vmem>>, vector<128x128xf32>
    %c0_2 = arith.constant 0 : index
    %c0_3 = arith.constant 0 : index
    %4 = vector.load %arg2[%c0_2, %c0_3] : memref<128x256xf32, #tpu.memory_space<vmem>>, vector<128x256xf32>
    %c0_4 = arith.constant 0 : index
    %c0_5 = arith.constant 0 : index
    %5 = vector.load %arg3[%c0_4, %c0_5] : memref<256x128xf32, #tpu.memory_space<vmem>>, vector<256x128xf32>
    %cst = arith.constant dense<0.000000e+00> : vector<128x128xf32>
    %6 = tpu.matmul %4, %5, %cst {dimension_numbers = #tpu.dot_dimension_numbers<[1], [0], [0], [1], [0, 0, 1, 1], [], []>} : vector<128x256xf32>, vector<256x128xf32>, vector<128x128xf32> -> vector<128x128xf32>
    %7 = arith.addf %3, %6 : vector<128x128xf32>
    %c0_6 = arith.constant 0 : index
    %c0_7 = arith.constant 0 : index
    %8 = vector.load %arg5[%c0_6, %c0_7] : memref<128x128xf32, #tpu.memory_space<vmem>>, vector<128x128xf32>
    tpu.vector_store %arg5[%c0_6, %c0_7], %7 {strides = array<i32>} : memref<128x128xf32, #tpu.memory_space<vmem>>, vector<128x128xf32>,
    %c0_i32_8 = arith.constant 0 : i32
    %9 = arith.cmpi eq, %arg1, %c0_i32_8 : i32
    %10 = arith.extui %9 : i1 to i32
    %c0_i32_9 = arith.constant 0 : i32
    %11 = arith.cmpi ne, %10, %c0_i32_9 : i32
    scf.if %11 {
      %c0_10 = arith.constant 0 : index
      %c0_11 = arith.constant 0 : index
      %12 = vector.load %arg5[%c0_10, %c0_11] : memref<128x128xf32, #tpu.memory_space<vmem>>, vector<128x128xf32>
      %13 = arith.mulf %12, %12 : vector<128x128xf32>
      %cst_12 = arith.constant dense<0.000000e+00> : vector<128xf32>
      %14 = vector.multi_reduction <add>, %13, %cst_12 [1] : vector<128x128xf32> to vector<128xf32>
      %15 = vector.shape_cast %14 : vector<128xf32> to vector<128x1xf32>
      %16 = math.rsqrt %15 : vector<128x1xf32>
      %17 = vector.broadcast %16 : vector<128x1xf32> to vector<128x128xf32>
      %18 = arith.mulf %12, %17 : vector<128x128xf32>
      %c0_13 = arith.constant 0 : index
      %c0_14 = arith.constant 0 : index
      %19 = vector.load %arg4[%c0_13, %c0_14] : memref<128x128xf32, #tpu.memory_space<vmem>>, vector<128x128xf32>
      tpu.vector_store %arg4[%c0_13, %c0_14], %18 {strides = array<i32>} : memref<128x128xf32, #tpu.memory_space<vmem>>, vector<128x128xf32>,
    } else {
    }
    return
  }
  func.func @transform_0(%arg0: i32, %arg1: i32) -> (i32, i32) {
    %c0_i32 = arith.constant 0 : i32
    return %arg0, %arg1 : i32, i32
  }
  func.func @transform_1(%arg0: i32, %arg1: i32) -> (i32, i32) {
    %c0_i32 = arith.constant 0 : i32
    %c0_i32_0 = arith.constant 0 : i32
    return %arg1, %c0_i32 : i32, i32
  }
  func.func @transform_2(%arg0: i32, %arg1: i32) -> (i32, i32) {
    %c0_i32 = arith.constant 0 : i32
    %c0_i32_0 = arith.constant 0 : i32
    return %arg0, %c0_i32 : i32, i32
  }
}

</mosaic_0001>

<bundles_post_ra>
// kernel: mymodel_forward.5
= control target key start
LH: loop header
LB: loop body
LE: loop exit
PB: predicated region body
PF: predicated region fallthrough
CT: control target
= control target key end

     0   :  { %s948_s9 = smov 0   ;;  %s950_s10 = smov 0   ;;  %s1216_s0 = inlined_call_operand.vmem [shape: f32[256,256], index: 0, kind: input, shape index: {}]   ;;  %s1217_s1 = inlined_call_operand.vmem [shape: f32[256,128], index: 1, kind: input, shape index: {}]   ;;  %s1218_s2 = inlined_call_operand.vmem [shape: f32[256,128], index: 2, kind: output, shape index: {}]  }
   0x1   :  { %s952_s11 = smov 0  }
   0x2 LB: > { %s24_s12 = sadd.s32 1, %s927_s10  ;;  %p812_p0 = scmp.ge.s32.totalorder %s931_s11, 1  ;;  %s931_s11 = sphi %s952_s11, %s12_s11   ;;  %s927_s10 = sphi %s950_s10, %s1220_s10   ;;  %s923_s9 = sphi %s948_s9, %s1219_s9  }
   0x3   : > { %p26_p1 = scmp.ge.s32.totalorder %s24_s12, 2  ;;  %p144_p2 = scmp.lt.s32.totalorder %s931_s11, 3 }
   0x5   : > { %s1222_s12 = smov (%p26_p1, %s24_s12), 0  ;;  %p145_p3 = pnand %p812_p0, %p144_p2 }
   0x6   : > { %s813_s21 = sshll.u32 (!%p145_p3), %s923_s9, 4 }
   0x7   : > { %148 = sbr.rel (%p145_p3) target bundleno = 377 (0x179), region = 28  ;;  %p178_p4 = scmp.lt.s32.totalorder (!%p145_p3), %s813_s21, 31 }
   0xc   : > { %v283_v0 = vld [vmem:[%s1217_s1 + $0x78] sm:$0xff]  ;;  %v282_v2 = vld [vmem:[%s1217_s1 + $0x70] sm:$0xff]  ;;  %v281_v4 = vld [vmem:[%s1217_s1 + $0x68] sm:$0xff]  ;;  %s1224_s21 = smov (!%p178_p4, %s813_s21), 31 }
   0xd   : > { %v299_v1 = vld [vmem:[%s1217_s1 + $0xf8] sm:$0xff]  ;;  %300 = vmatpush.msra.mxu0 %v283_v0  ;;  %821 = vmatpush.msra.mxu2 %v283_v0  ;;  %v298_v3 = vld [vmem:[%s1217_s1 + $0xf0] sm:$0xff]  ;;  %v297_v5 = vld [vmem:[%s1217_s1 + $0xe8] sm:$0xff]  ;;  %s820_s19 = sshll.u32 %s1224_s21, 4  ;;  %s817_s5 = sshll.u32 %s1224_s21, 3 }
   0xe   : > { %365 = vmatpush.msra.mxu1 %v299_v1  ;;  %837 = vmatpush.msra.mxu3 %v299_v1  ;;  %v280_v6 = vld [vmem:[%s1217_s1 + $0x60] sm:$0xff]  ;;  %v279_v8 = vld [vmem:[%s1217_s1 + $0x58] sm:$0xff]  ;;  %v278_v10 = vld [vmem:[%s1217_s1 + $0x50] sm:$0xff]  ;;  %s1065_s28 = scalar_lea.vmem %s1216_s0, %s820_s19  ;;  %s1173_s8 = scalar_lea.vmem %s1218_s2, %s817_s5 }
   0xf   : > { %301 = vmatpush.msra.mxu0 %v282_v2  ;;  %822 = vmatpush.msra.mxu2 %v282_v2  ;;  %v296_v7 = vld [vmem:[%s1217_s1 + $0xe0] sm:$0xff]  ;;  %v295_v9 = vld [vmem:[%s1217_s1 + $0xd8] sm:$0xff]  ;;  %v294_v11 = vld [vmem:[%s1217_s1 + $0xd0] sm:$0xff] }
  0x10   : > { %366 = vmatpush.msra.mxu1 %v298_v3  ;;  %838 = vmatpush.msra.mxu3 %v298_v3  ;;  %v277_v12 = vld [vmem:[%s1217_s1 + $0x48] sm:$0xff]  ;;  %v276_v14 = vld [vmem:[%s1217_s1 + $0x40] sm:$0xff]  ;;  %v275_v16 = vld [vmem:[%s1217_s1 + $0x38] sm:$0xff] }
  0x11   : > { %302 = vmatpush.msra.mxu0 %v281_v4  ;;  %823 = vmatpush.msra.mxu2 %v281_v4  ;;  %v293_v13 = vld [vmem:[%s1217_s1 + $0xc8] sm:$0xff]  ;;  %v292_v15 = vld [vmem:[%s1217_s1 + $0xc0] sm:$0xff]  ;;  %v291_v17 = vld [vmem:[%s1217_s1 + $0xb8] sm:$0xff] }
  0x12   : > { %367 = vmatpush.msra.mxu1 %v297_v5  ;;  %839 = vmatpush.msra.mxu3 %v297_v5  ;;  %v274_v18 = vld [vmem:[%s1217_s1 + $0x30] sm:$0xff]  ;;  %v273_v20 = vld [vmem:[%s1217_s1 + $0x28] sm:$0xff]  ;;  %v272_v22 = vld [vmem:[%s1217_s1 + $0x20] sm:$0xff] }
  0x13   : > { %303 = vmatpush.msra.mxu0 %v280_v6  ;;  %824 = vmatpush.msra.mxu2 %v280_v6  ;;  %v290_v19 = vld [vmem:[%s1217_s1 + $0xb0] sm:$0xff]  ;;  %v289_v21 = vld [vmem:[%s1217_s1 + $0xa8] sm:$0xff]  ;;  %v288_v23 = vld [vmem:[%s1217_s1 + $0xa0] sm:$0xff] }
  0x14   : > { %368 = vmatpush.msra.mxu1 %v296_v7  ;;  %840 = vmatpush.msra.mxu3 %v296_v7  ;;  %v271_v24 = vld [vmem:[%s1217_s1 + $0x18] sm:$0xff]  ;;  %v270_v26 = vld [vmem:[%s1217_s1 + $0x10] sm:$0xff]  ;;  %v269_v28 = vld [vmem:[%s1217_s1 + $0x8] sm:$0xff] }
  0x15   : > { %304 = vmatpush.msra.mxu0 %v279_v8  ;;  %825 = vmatpush.msra.mxu2 %v279_v8  ;;  %v287_v25 = vld [vmem:[%s1217_s1 + $0x98] sm:$0xff]  ;;  %v286_v27 = vld [vmem:[%s1217_s1 + $0x90] sm:$0xff]  ;;  %v285_v29 = vld [vmem:[%s1217_s1 + $0x88] sm:$0xff] }
  0x16   : > { %369 = vmatpush.msra.mxu1 %v295_v9  ;;  %841 = vmatpush.msra.mxu3 %v295_v9  ;;  %v268_v30 = vld [vmem:[%s1217_s1] sm:$0xff]  ;;  %v237_v34 = vld [vmem:[%s1065_s28 + $0x8] sm:$0xff]  ;;  %v238_v36 = vld [vmem:[%s1065_s28 + $0x10] sm:$0xff] }
  0x17   : > { %305 = vmatpush.msra.mxu0 %v278_v10  ;;  %826 = vmatpush.msra.mxu2 %v278_v10  ;;  %v284_v31 = vld [vmem:[%s1217_s1 + $0x80] sm:$0xff]  ;;  %v253_v35 = vld [vmem:[%s1065_s28 + $0x88] sm:$0xff]  ;;  %v254_v37 = vld [vmem:[%s1065_s28 + $0x90] sm:$0xff] }
  0x18   : > { %370 = vmatpush.msra.mxu1 %v294_v11  ;;  %842 = vmatpush.msra.mxu3 %v294_v11  ;;  %v236_v32 = vld [vmem:[%s1065_s28] sm:$0xff]  ;;  %v239_v38 = vld [vmem:[%s1065_s28 + $0x18] sm:$0xff]  ;;  %v241_v42 = vld [vmem:[%s1065_s28 + $0x28] sm:$0xff] }
  0x19   : > { %306 = vmatpush.msra.mxu0 %v277_v12  ;;  %827 = vmatpush.msra.mxu2 %v277_v12  ;;  %v252_v33 = vld [vmem:[%s1065_s28 + $0x80] sm:$0xff]  ;;  %v255_v39 = vld [vmem:[%s1065_s28 + $0x98] sm:$0xff]  ;;  %v257_v43 = vld [vmem:[%s1065_s28 + $0xa8] sm:$0xff] }
  0x1a   : > { %371 = vmatpush.msra.mxu1 %v293_v13  ;;  %843 = vmatpush.msra.mxu3 %v293_v13  ;;  %v240_v40 = vld [vmem:[%s1065_s28 + $0x20] sm:$0xff]  ;;  %v242_v44 = vld [vmem:[%s1065_s28 + $0x30] sm:$0xff]  ;;  %v243_v46 = vld [vmem:[%s1065_s28 + $0x38] sm:$0xff] }
  0x1b   : > { %307 = vmatpush.msra.mxu0 %v276_v14  ;;  %828 = vmatpush.msra.mxu2 %v276_v14  ;;  %v256_v41 = vld [vmem:[%s1065_s28 + $0xa0] sm:$0xff]  ;;  %v258_v45 = vld [vmem:[%s1065_s28 + $0xb0] sm:$0xff]  ;;  %v259_v47 = vld [vmem:[%s1065_s28 + $0xb8] sm:$0xff] }
  0x1c   : > { %372 = vmatpush.msra.mxu1 %v292_v15  ;;  %844 = vmatpush.msra.mxu3 %v292_v15  ;;  %v244_v48 = vld [vmem:[%s1065_s28 + $0x40] sm:$0xff]  ;;  %v245_v50 = vld [vmem:[%s1065_s28 + $0x48] sm:$0xff]  ;;  %v246_v52 = vld [vmem:[%s1065_s28 + $0x50] sm:$0xff] }
  0x1d   : > { %308 = vmatpush.msra.mxu0 %v275_v16  ;;  %829 = vmatpush.msra.mxu2 %v275_v16  ;;  %v260_v49 = vld [vmem:[%s1065_s28 + $0xc0] sm:$0xff]  ;;  %v261_v51 = vld [vmem:[%s1065_s28 + $0xc8] sm:$0xff]  ;;  %v262_v53 = vld [vmem:[%s1065_s28 + $0xd0] sm:$0xff] }
  0x1e   : > { %373 = vmatpush.msra.mxu1 %v291_v17  ;;  %845 = vmatpush.msra.mxu3 %v291_v17  ;;  %v247_v54 = vld [vmem:[%s1065_s28 + $0x58] sm:$0xff]  ;;  %v248_v56 = vld [vmem:[%s1065_s28 + $0x60] sm:$0xff]  ;;  %v249_v58 = vld [vmem:[%s1065_s28 + $0x68] sm:$0xff] }
  0x1f   : > { %309 = vmatpush.msra.mxu0 %v274_v18  ;;  %830 = vmatpush.msra.mxu2 %v274_v18  ;;  %v263_v55 = vld [vmem:[%s1065_s28 + $0xd8] sm:$0xff]  ;;  %v264_v57 = vld [vmem:[%s1065_s28 + $0xe0] sm:$0xff]  ;;  %v265_v59 = vld [vmem:[%s1065_s28 + $0xe8] sm:$0xff] }
  0x20   : > { %374 = vmatpush.msra.mxu1 %v290_v19  ;;  %846 = vmatpush.msra.mxu3 %v290_v19  ;;  %v250_v60 = vld [vmem:[%s1065_s28 + $0x70] sm:$0xff]  ;;  %v251_v62 = vld [vmem:[%s1065_s28 + $0x78] sm:$0xff] }
  0x21   : > { %310 = vmatpush.msra.mxu0 %v273_v20  ;;  %831 = vmatpush.msra.mxu2 %v273_v20  ;;  %v266_v61 = vld [vmem:[%s1065_s28 + $0xf0] sm:$0xff]  ;;  %v267_v63 = vld [vmem:[%s1065_s28 + $0xf8] sm:$0xff] }
  0x22   : > { %375 = vmatpush.msra.mxu1 %v289_v21  ;;  %847 = vmatpush.msra.mxu3 %v289_v21 }
  0x23   : > { %311 = vmatpush.msra.mxu0 %v272_v22  ;;  %832 = vmatpush.msra.mxu2 %v272_v22 }
  0x24   : > { %376 = vmatpush.msra.mxu1 %v288_v23  ;;  %848 = vmatpush.msra.mxu3 %v288_v23 }
  0x25   : > { %312 = vmatpush.msra.mxu0 %v271_v24  ;;  %833 = vmatpush.msra.mxu2 %v271_v24 }
  0x26   : > { %377 = vmatpush.msra.mxu1 %v287_v25  ;;  %849 = vmatpush.msra.mxu3 %v287_v25 }
  0x27   : > { %313 = vmatpush.msra.mxu0 %v270_v26  ;;  %834 = vmatpush.msra.mxu2 %v270_v26 }
  0x28   : > { %378 = vmatpush.msra.mxu1 %v286_v27  ;;  %850 = vmatpush.msra.mxu3 %v286_v27 }
  0x29   : > { %314 = vmatpush.msra.mxu0 %v269_v28  ;;  %835 = vmatpush.msra.mxu2 %v269_v28 }
  0x2a   : > { %379 = vmatpush.msra.mxu1 %v285_v29  ;;  %851 = vmatpush.msra.mxu3 %v285_v29 }
  0x2b   : > { %315 = vmatpush.msra.mxu0 %v268_v30  ;;  %836 = vmatpush.msra.mxu2 %v268_v30 }
  0x2c   : > { %380 = vmatpush.msra.mxu1 %v284_v31  ;;  %852 = vmatpush.msra.mxu3 %v284_v31 }
  0x2d   : > { %316 = vmatmul.f32.vlgmr.msra.gmra.mxu0 %v236_v32  ;;  %340 = vmatmul.f32.vlgmr.msra.gmra.mxu2 %v252_v33 }
  0x2e   : > { %381 = vmatmul.f32.vlgmr.msra.gmra.mxu1 %v237_v34  ;;  %405 = vmatmul.f32.vlgmr.msra.gmra.mxu3 %v253_v35 }
  0x35   : > { %319 = vmatmul.f32.gmra.mxu0 %v238_v36  ;;  %343 = vmatmul.f32.gmra.mxu2 %v254_v37 }
  0x36   : > { %384 = vmatmul.f32.gmra.mxu1 %v239_v38  ;;  %408 = vmatmul.f32.gmra.mxu3 %v255_v39 }
  0x3d   : > { %322 = vmatmul.f32.gmra.mxu0 %v240_v40  ;;  %346 = vmatmul.f32.gmra.mxu2 %v256_v41 }
  0x3e   : > { %387 = vmatmul.f32.gmra.mxu1 %v241_v42  ;;  %411 = vmatmul.f32.gmra.mxu3 %v257_v43 }
  0x45   : > { %325 = vmatmul.f32.gmra.mxu0 %v242_v44  ;;  %349 = vmatmul.f32.gmra.mxu2 %v258_v45 }
  0x46   : > { %390 = vmatmul.f32.gmra.mxu1 %v243_v46  ;;  %414 = vmatmul.f32.gmra.mxu3 %v259_v47 }
  0x4d   : > { %328 = vmatmul.f32.gmra.mxu0 %v244_v48  ;;  %352 = vmatmul.f32.gmra.mxu2 %v260_v49 }
  0x4e   : > { %393 = vmatmul.f32.gmra.mxu1 %v245_v50  ;;  %417 = vmatmul.f32.gmra.mxu3 %v261_v51 }
  0x55   : > { %331 = vmatmul.f32.gmra.mxu0 %v246_v52  ;;  %355 = vmatmul.f32.gmra.mxu2 %v262_v53 }
  0x56   : > { %396 = vmatmul.f32.gmra.mxu1 %v247_v54  ;;  %420 = vmatmul.f32.gmra.mxu3 %v263_v55 }
  0x5d   : > { %334 = vmatmul.f32.gmra.mxu0 %v248_v56  ;;  %358 = vmatmul.f32.gmra.mxu2 %v264_v57 }
  0x5e   : > { %399 = vmatmul.f32.gmra.mxu1 %v249_v58  ;;  %423 = vmatmul.f32.gmra.mxu3 %v265_v59 }
  0x65   : > { %337 = vmatmul.f32.gmra.mxu0 %v250_v60  ;;  %361 = vmatmul.f32.gmra.mxu2 %v266_v61 }
  0x66   : > { %402 = vmatmul.f32.gmra.mxu1 %v251_v62  ;;  %426 = vmatmul.f32.gmra.mxu3 %v267_v63 }
  0xaa   : > { %v317_v0 = vpop.f32.mrf.mxu0 }
  0xab   : > { %v382_v1 = vpop.f32.mrf.mxu1 }
  0xac   : > { %v1105_v2 = vadd.f32 %v382_v1, %v317_v0 }
  0xae   : > { %v481_v3 = vmul.f32 %v1105_v2, %v1105_v2 }
  0xb0   : > { %497 = vadd.xlane.f32.xlu0 %v481_v3  ;;  %v341_v4 = vpop.f32.mrf.mxu2 }
  0xb1   : > { %v406_v5 = vpop.f32.mrf.mxu3 }
  0xb2   : > { %v1109_v6 = vadd.f32 %v406_v5, %v341_v4  ;;  %v320_v7 = vpop.f32.mrf.mxu0 }
  0xb3   : > { %v385_v8 = vpop.f32.mrf.mxu1 }
  0xb4   : > { %v1111_v9 = vadd.f32 %v385_v8, %v320_v7  ;;  %v489_v10 = vmul.f32 %v1109_v6, %v1109_v6 }
  0xb6   : > { %513 = vadd.xlane.f32.xlu2 %v489_v10  ;;  %v482_v11 = vmul.f32 %v1111_v9, %v1111_v9 }
  0xb8   : > { %499 = vadd.xlane.f32.xlu0 %v482_v11  ;;  %v344_v12 = vpop.f32.mrf.mxu2 }
  0xb9   : > { %v409_v13 = vpop.f32.mrf.mxu3 }
  0xba   : > { %v1117_v14 = vadd.f32 %v409_v13, %v344_v12  ;;  %v323_v15 = vpop.f32.mrf.mxu0 }
  0xbb   : > { %v388_v16 = vpop.f32.mrf.mxu1 }
  0xbc   : > { %v1119_v17 = vadd.f32 %v388_v16, %v323_v15  ;;  %v490_v18 = vmul.f32 %v1117_v14, %v1117_v14 }
  0xbe   : > { %v483_v19 = vmul.f32 %v1119_v17, %v1119_v17 }
  0xc0   : > { %515 = vadd.xlane.f32.xlu0 %v490_v18  ;;  %501 = vadd.xlane.f32.xlu1 %v483_v19  ;;  %v347_v20 = vpop.f32.mrf.mxu2 }
  0xc1   : > { %v412_v21 = vpop.f32.mrf.mxu3 }
  0xc2   : > { %v1125_v22 = vadd.f32 %v412_v21, %v347_v20  ;;  %v326_v23 = vpop.f32.mrf.mxu0 }
  0xc3   : > { %v391_v24 = vpop.f32.mrf.mxu1 }
  0xc4   : > { %v491_v25 = vmul.f32 %v1125_v22, %v1125_v22  ;;  %v1129_v28 = vadd.f32 %v391_v24, %v326_v23 }
  0xc6   : > { %v484_v33 = vmul.f32 %v1129_v28, %v1129_v28 }
  0xc8   : > { %517 = vadd.xlane.f32.xlu1 %v491_v25  ;;  %v350_v26 = vpop.f32.mrf.mxu2 }
  0xc9   : > { %v415_v27 = vpop.f32.mrf.mxu3 }
  0xca   : > { %v1131_v29 = vadd.f32 %v415_v27, %v350_v26  ;;  %v329_v30 = vpop.f32.mrf.mxu0 }
  0xcb   : > { %v394_v31 = vpop.f32.mrf.mxu1 }
  0xcc   : > { %v492_v32 = vmul.f32 %v1131_v29, %v1131_v29  ;;  %v1137_v34 = vadd.f32 %v394_v31, %v329_v30 }
  0xce   : > { %519 = vadd.xlane.f32.xlu2 %v492_v32  ;;  %v485_v41 = vmul.f32 %v1137_v34, %v1137_v34 }
  0xd0   : > { %503 = vadd.xlane.f32.xlu1 %v484_v33  ;;  %v353_v35 = vpop.f32.mrf.mxu2 }
  0xd1   : > { %v418_v36 = vpop.f32.mrf.mxu3 }
  0xd2   : > { %v1139_v37 = vadd.f32 %v418_v36, %v353_v35  ;;  %v332_v38 = vpop.f32.mrf.mxu0 }
  0xd3   : > { %v397_v39 = vpop.f32.mrf.mxu1 }
  0xd4   : > { %v493_v40 = vmul.f32 %v1139_v37, %v1139_v37  ;;  %v1145_v42 = vadd.f32 %v397_v39, %v332_v38 }
  0xd6   : > { %521 = vadd.xlane.f32.xlu0 %v493_v40  ;;  %505 = vadd.xlane.f32.xlu2 %v485_v41  ;;  %v486_v48 = vmul.f32 %v1145_v42, %v1145_v42 }
  0xd8   : > { %v356_v43 = vpop.f32.mrf.mxu2 }
  0xd9   : > { %v421_v44 = vpop.f32.mrf.mxu3 }
  0xda   : > { %v335_v45 = vpop.f32.mrf.mxu0  ;;  %v1161_v60 = vadd.f32 %v421_v44, %v356_v43 }
  0xdb   : > { %v400_v46 = vpop.f32.mrf.mxu1 }
  0xdc   : > { %v1147_v47 = vadd.f32 %v400_v46, %v335_v45  ;;  %v494_v63 = vmul.f32 %v1161_v60, %v1161_v60 }
  0xde   : > { %507 = vadd.xlane.f32.xlu2 %v486_v48  ;;  %v487_v49 = vmul.f32 %v1147_v47, %v1147_v47 }
  0xe0   : > { %509 = vadd.xlane.f32.xlu0 %v487_v49  ;;  %v359_v50 = vpop.f32.mrf.mxu2 }
  0xe1   : > { %v424_v51 = vpop.f32.mrf.mxu3 }
  0xe2   : > { %v1153_v52 = vadd.f32 %v424_v51, %v359_v50  ;;  %v338_v53 = vpop.f32.mrf.mxu0 }
  0xe3   : > { %v403_v54 = vpop.f32.mrf.mxu1 }
  0xe4   : > { %v1155_v55 = vadd.f32 %v403_v54, %v338_v53  ;;  %v495_v56 = vmul.f32 %v1153_v52, %v1153_v52 }
  0xe6   : > { %525 = vadd.xlane.f32.xlu2 %v495_v56  ;;  %v488_v57 = vmul.f32 %v1155_v55, %v1155_v55 }
  0xe8   : > { %511 = vadd.xlane.f32.xlu1 %v488_v57  ;;  %v362_v58 = vpop.f32.mrf.mxu2 }
  0xe9   : > { %v427_v59 = vpop.f32.mrf.mxu3 }
  0xea   : > { %v1163_v61 = vadd.f32 %v427_v59, %v362_v58 }
  0xec   : > { %v496_v62 = vmul.f32 %v1163_v61, %v1163_v61 }
  0xee   : > { %527 = vadd.xlane.f32.xlu0 %v496_v62 }
  0xf0   : > { %523 = vadd.xlane.f32.xlu1 %v494_v63 }
 0x123   : > { %v498_v0 = vpop.xlane.xlu0 %497 }
 0x124   : > { %877 = vrsqrt.f32 %v498_v0  ;;  %vm535_vm1 = vweird.f32 %v498_v0 }
 0x129   : > { %v514_v1 = vpop.xlane.xlu2 %513 }
 0x12a   : > { %v878_v3 = vpop.eup %877  ;;  %879 = vrsqrt.f32 %v514_v1  ;;  %vm615_vm4 = vweird.f32 %v514_v1 }
 0x12b   : > { %v530_v4 = vmul.f32 %v878_v3, %v498_v0  ;;  %v500_v5 = vpop.xlane.xlu0 %499  ;;  %vm536_vm0 = vweird.f32 %v878_v3 }
 0x12c   : > { %881 = vrsqrt.f32 %v500_v5  ;;  %vm537_vm2 = vmor %vm535_vm1, %vm536_vm0  ;;  %vm545_vm7 = vweird.f32 %v500_v5 }
 0x12d   : > { %v531_v7 = vmul.f32 %v878_v3, %v530_v4 }
 0x12f   : > { %v532_v8 = vmul.f32 0.5, %v531_v7 }
 0x130   : > { %v880_v10 = vpop.eup %879 }
 0x131   : > { %v533_v11 = vsub.f32 1.5, %v532_v8  ;;  %v610_v12 = vmul.f32 %v880_v10, %v514_v1  ;;  %vm616_vm3 = vweird.f32 %v880_v10 }
 0x132   : > { %v882_v13 = vpop.eup %881  ;;  %vm617_vm6 = vmor %vm615_vm4, %vm616_vm3 }
 0x133   : > { %v534_v15 = vmul.f32 %v878_v3, %v533_v11  ;;  %v611_v16 = vmul.f32 %v880_v10, %v610_v12  ;;  %v540_v18 = vmul.f32 %v882_v13, %v500_v5  ;;  %v516_v19 = vpop.xlane.xlu0 %515  ;;  %v502_v20 = vpop.xlane.xlu1 %501  ;;  %vm546_vm5 = vweird.f32 %v882_v13 }
 0x134   : > { %883 = vrsqrt.f32 %v516_v19  ;;  %vm547_vm8 = vmor %vm545_vm7, %vm546_vm5  ;;  %vm625_vm11 = vweird.f32 %v516_v19  ;;  %vm555_vm13 = vweird.f32 %v502_v20 }
 0x135   : > { %v538_v21 = vsel %vm537_vm2, %v878_v3, %v534_v15  ;;  %v612_v23 = vmul.f32 0.5, %v611_v16  ;;  %v541_v24 = vmul.f32 %v882_v13, %v540_v18  ;;  %885 = vrsqrt.f32 %v502_v20 }
 0x136   : > { %v689_v25 = vmul.f32 %v538_v21, %v1105_v2 }
 0x137   : > { %v613_v26 = vsub.f32 1.5, %v612_v23  ;;  %v542_v27 = vmul.f32 0.5, %v541_v24 }
 0x138   : > { %705 = vst [vmem:[%s1173_s8] sm:$0xff] %v689_v25 }
 0x139   : > { %v614_v30 = vmul.f32 %v880_v10, %v613_v26  ;;  %v543_v31 = vsub.f32 1.5, %v542_v27 }
 0x13a   : > { %v884_v32 = vpop.eup %883 }
 0x13b   : > { %v886_v33 = vpop.eup %885  ;;  %v618_v35 = vsel %vm617_vm6, %v880_v10, %v614_v30  ;;  %v544_v36 = vmul.f32 %v882_v13, %v543_v31  ;;  %v620_v38 = vmul.f32 %v884_v32, %v516_v19  ;;  %v518_v39 = vpop.xlane.xlu1 %517  ;;  %vm626_vm9 = vweird.f32 %v884_v32 }
 0x13c   : > { %v697_v2 = vmul.f32 %v618_v35, %v1109_v6  ;;  %v550_v40 = vmul.f32 %v886_v33, %v502_v20  ;;  %887 = vrsqrt.f32 %v518_v39  ;;  %vm556_vm10 = vweird.f32 %v886_v33  ;;  %vm627_vm12 = vmor %vm625_vm11, %vm626_vm9 }
 0x13d   : > { %v548_v41 = vsel %vm547_vm8, %v882_v13, %v544_v36  ;;  %v621_v43 = vmul.f32 %v884_v32, %v620_v38  ;;  %vm557_vm14 = vmor %vm555_vm13, %vm556_vm10  ;;  %vm635_vm0 = vweird.f32 %v518_v39 }
 0x13e   : > { %713 = vst [vmem:[%s1173_s8 + $0x40] sm:$0xff] %v697_v2  ;;  %v690_v44 = vmul.f32 %v548_v41, %v1111_v9  ;;  %v551_v45 = vmul.f32 %v886_v33, %v550_v40 }
 0x13f   : > { %v622_v46 = vmul.f32 0.5, %v621_v43 }
 0x140   : > { %706 = vst [vmem:[%s1173_s8 + $0x8] sm:$0xff] %v690_v44  ;;  %v552_v48 = vmul.f32 0.5, %v551_v45 }
 0x141   : > { %v623_v49 = vsub.f32 1.5, %v622_v46  ;;  %v520_v50 = vpop.xlane.xlu2 %519 }
 0x142   : > { %v888_v51 = vpop.eup %887  ;;  %v553_v53 = vsub.f32 1.5, %v552_v48  ;;  %889 = vrsqrt.f32 %v520_v50  ;;  %vm645_vm3 = vweird.f32 %v520_v50 }
 0x143   : > { %v624_v6 = vmul.f32 %v884_v32, %v623_v49  ;;  %v630_v54 = vmul.f32 %v888_v51, %v518_v39  ;;  %v504_v56 = vpop.xlane.xlu1 %503  ;;  %vm636_vm15 = vweird.f32 %v888_v51 }
 0x144   : > { %v554_v57 = vmul.f32 %v886_v33, %v553_v53  ;;  %891 = vrsqrt.f32 %v504_v56  ;;  %vm637_vm1 = vmor %vm635_vm0, %vm636_vm15  ;;  %vm565_vm6 = vweird.f32 %v504_v56 }
 0x145   : > { %v628_v9 = vsel %vm627_vm12, %v884_v32, %v624_v6  ;;  %v631_v58 = vmul.f32 %v888_v51, %v630_v54 }
 0x146   : > { %v698_v59 = vmul.f32 %v628_v9, %v1117_v14  ;;  %v558_v62 = vsel %vm557_vm14, %v886_v33, %v554_v57 }
 0x147   : > { %v691_v63 = vmul.f32 %v558_v62, %v1119_v17  ;;  %v632_v0 = vmul.f32 0.5, %v631_v58 }
 0x148   : > { %v890_v1 = vpop.eup %889  ;;  %714 = vst [vmem:[%s1173_s8 + $0x48] sm:$0xff] %v698_v59 }
 0x149   : > { %707 = vst [vmem:[%s1173_s8 + $0x10] sm:$0xff] %v691_v63  ;;  %v633_v3 = vsub.f32 1.5, %v632_v0  ;;  %v640_v4 = vmul.f32 %v890_v1, %v520_v50  ;;  %v522_v5 = vpop.xlane.xlu0 %521  ;;  %v506_v7 = vpop.xlane.xlu2 %505  ;;  %vm646_vm2 = vweird.f32 %v890_v1 }
 0x14a   : > { %v892_v8 = vpop.eup %891  ;;  %893 = vrsqrt.f32 %v522_v5  ;;  %vm647_vm5 = vmor %vm645_vm3, %vm646_vm2  ;;  %vm655_vm9 = vweird.f32 %v522_v5  ;;  %vm575_vm12 = vweird.f32 %v506_v7 }
 0x14b   : > { %v634_v10 = vmul.f32 %v888_v51, %v633_v3  ;;  %v641_v11 = vmul.f32 %v890_v1, %v640_v4  ;;  %v560_v12 = vmul.f32 %v892_v8, %v504_v56  ;;  %895 = vrsqrt.f32 %v506_v7 }
 0x14c   : > { %vm566_vm4 = vweird.f32 %v892_v8 }
 0x14d   : > { %v638_v14 = vsel %vm637_vm1, %v888_v51, %v634_v10  ;;  %v642_v17 = vmul.f32 0.5, %v641_v11  ;;  %v561_v13 = vmul.f32 %v892_v8, %v560_v12  ;;  %vm567_vm7 = vmor %vm565_vm6, %vm566_vm4 }
 0x14e   : > { %v699_v15 = vmul.f32 %v638_v14, %v1125_v22 }
 0x14f   : > { %v643_v16 = vsub.f32 1.5, %v642_v17  ;;  %v562_v18 = vmul.f32 0.5, %v561_v13 }
 0x150   : > { %v894_v19 = vpop.eup %893  ;;  %715 = vst [vmem:[%s1173_s8 + $0x50] sm:$0xff] %v699_v15 }
 0x151   : > { %v644_v20 = vmul.f32 %v890_v1, %v643_v16  ;;  %v563_v21 = vsub.f32 1.5, %v562_v18  ;;  %v650_v23 = vmul.f32 %v894_v19, %v522_v5  ;;  %v508_v24 = vpop.xlane.xlu2 %507  ;;  %v896_v25 = vpop.eup %895  ;;  %vm656_vm8 = vweird.f32 %v894_v19 }
 0x152   : > { %897 = vrsqrt.f32 %v508_v24  ;;  %v570_v30 = vmul.f32 %v896_v25, %v506_v7  ;;  %vm576_vm10 = vweird.f32 %v896_v25  ;;  %vm657_vm11 = vmor %vm655_vm9, %vm656_vm8  ;;  %vm585_vm15 = vweird.f32 %v508_v24 }
 0x153   : > { %v648_v26 = vsel %vm647_vm5, %v890_v1, %v644_v20  ;;  %v564_v27 = vmul.f32 %v892_v8, %v563_v21  ;;  %v651_v22 = vmul.f32 %v894_v19, %v650_v23  ;;  %v510_v31 = vpop.xlane.xlu0 %509  ;;  %vm577_vm13 = vmor %vm575_vm12, %vm576_vm10 }
 0x154   : > { %v700_v32 = vmul.f32 %v648_v26, %v1131_v29  ;;  %899 = vrsqrt.f32 %v510_v31  ;;  %v571_v36 = vmul.f32 %v896_v25, %v570_v30  ;;  %vm595_vm2 = vweird.f32 %v510_v31 }
 0x155   : > { %v568_v33 = vsel %vm567_vm7, %v892_v8, %v564_v27  ;;  %v652_v35 = vmul.f32 0.5, %v651_v22 }
 0x156   : > { %716 = vst [vmem:[%s1173_s8 + $0x58] sm:$0xff] %v700_v32  ;;  %v692_v38 = vmul.f32 %v568_v33, %v1129_v28  ;;  %v572_v2 = vmul.f32 0.5, %v571_v36 }
 0x157   : > { %v653_v39 = vsub.f32 1.5, %v652_v35 }
 0x158   : > { %v898_v40 = vpop.eup %897  ;;  %708 = vst [vmem:[%s1173_s8 + $0x18] sm:$0xff] %v692_v38  ;;  %v573_v43 = vsub.f32 1.5, %v572_v2 }
 0x159   : > { %v654_v41 = vmul.f32 %v894_v19, %v653_v39  ;;  %v580_v44 = vmul.f32 %v898_v40, %v508_v24  ;;  %v526_v45 = vpop.xlane.xlu2 %525  ;;  %vm586_vm14 = vweird.f32 %v898_v40 }
 0x15a   : > { %v900_v29 = vpop.eup %899  ;;  %901 = vrsqrt.f32 %v526_v45  ;;  %v574_v48 = vmul.f32 %v896_v25, %v573_v43  ;;  %vm587_vm1 = vmor %vm585_vm15, %vm586_vm14  ;;  %vm675_vm5 = vweird.f32 %v526_v45 }
 0x15b   : > { %v658_v46 = vsel %vm657_vm11, %v894_v19, %v654_v41  ;;  %v581_v28 = vmul.f32 %v898_v40, %v580_v44  ;;  %v590_v49 = vmul.f32 %v900_v29, %v510_v31  ;;  %v512_v50 = vpop.xlane.xlu1 %511  ;;  %vm596_vm0 = vweird.f32 %v900_v29 }
 0x15c   : > { %v701_v51 = vmul.f32 %v658_v46, %v1139_v37  ;;  %903 = vrsqrt.f32 %v512_v50  ;;  %v578_v53 = vsel %vm577_vm13, %v896_v25, %v574_v48  ;;  %vm597_vm3 = vmor %vm595_vm2, %vm596_vm0  ;;  %vm605_vm8 = vweird.f32 %v512_v50 }
 0x15d   : > { %v582_v6 = vmul.f32 0.5, %v581_v28  ;;  %v591_v54 = vmul.f32 %v900_v29, %v590_v49  ;;  %v693_v56 = vmul.f32 %v578_v53, %v1137_v34 }
 0x15e   : > { %717 = vst [vmem:[%s1173_s8 + $0x60] sm:$0xff] %v701_v51 }
 0x15f   : > { %v583_v57 = vsub.f32 1.5, %v582_v6  ;;  %v592_v9 = vmul.f32 0.5, %v591_v54  ;;  %709 = vst [vmem:[%s1173_s8 + $0x20] sm:$0xff] %v693_v56 }
 0x160   : > { %v902_v58 = vpop.eup %901 }
 0x161   : > { %v584_v59 = vmul.f32 %v898_v40, %v583_v57  ;;  %v593_v62 = vsub.f32 1.5, %v592_v9  ;;  %v670_v63 = vmul.f32 %v902_v58, %v526_v45  ;;  %v528_v0 = vpop.xlane.xlu0 %527  ;;  %vm676_vm4 = vweird.f32 %v902_v58 }
 0x162   : > { %v904_v37 = vpop.eup %903  ;;  %905 = vrsqrt.f32 %v528_v0  ;;  %vm677_vm7 = vmor %vm675_vm5, %vm676_vm4  ;;  %vm685_vm11 = vweird.f32 %v528_v0 }
 0x163   : > { %v588_v1 = vsel %vm587_vm1, %v898_v40, %v584_v59  ;;  %v594_v3 = vmul.f32 %v900_v29, %v593_v62  ;;  %v671_v34 = vmul.f32 %v902_v58, %v670_v63  ;;  %v600_v4 = vmul.f32 %v904_v37, %v512_v50  ;;  %v524_v5 = vpop.xlane.xlu1 %523 }
 0x164   : > { %v694_v7 = vmul.f32 %v588_v1, %v1145_v42  ;;  %907 = vrsqrt.f32 %v524_v5  ;;  %vm606_vm6 = vweird.f32 %v904_v37  ;;  %vm665_vm14 = vweird.f32 %v524_v5 }
 0x165   : > { %v598_v8 = vsel %vm597_vm3, %v900_v29, %v594_v3  ;;  %v672_v10 = vmul.f32 0.5, %v671_v34  ;;  %v601_v11 = vmul.f32 %v904_v37, %v600_v4  ;;  %vm607_vm9 = vmor %vm605_vm8, %vm606_vm6 }
 0x166   : > { %710 = vst [vmem:[%s1173_s8 + $0x28] sm:$0xff] %v694_v7  ;;  %v695_v12 = vmul.f32 %v598_v8, %v1147_v47 }
 0x167   : > { %v673_v14 = vsub.f32 1.5, %v672_v10  ;;  %v602_v17 = vmul.f32 0.5, %v601_v11 }
 0x168   : > { %v906_v13 = vpop.eup %905  ;;  %711 = vst [vmem:[%s1173_s8 + $0x30] sm:$0xff] %v695_v12 }
 0x169   : > { %v674_v15 = vmul.f32 %v902_v58, %v673_v14  ;;  %v603_v16 = vsub.f32 1.5, %v602_v17  ;;  %v680_v18 = vmul.f32 %v906_v13, %v528_v0  ;;  %vm686_vm10 = vweird.f32 %v906_v13 }
 0x16a   : > { %v908_v42 = vpop.eup %907  ;;  %vm687_vm13 = vmor %vm685_vm11, %vm686_vm10 }
 0x16b   : > { %v678_v19 = vsel %vm677_vm7, %v902_v58, %v674_v15  ;;  %v604_v20 = vmul.f32 %v904_v37, %v603_v16  ;;  %v681_v21 = vmul.f32 %v906_v13, %v680_v18  ;;  %v660_v23 = vmul.f32 %v908_v42, %v524_v5 }
 0x16c   : > { %v703_v47 = vmul.f32 %v678_v19, %v1153_v52  ;;  %vm666_vm12 = vweird.f32 %v908_v42 }
 0x16d   : > { %v608_v24 = vsel %vm607_vm9, %v904_v37, %v604_v20  ;;  %v682_v25 = vmul.f32 0.5, %v681_v21  ;;  %v661_v26 = vmul.f32 %v908_v42, %v660_v23  ;;  %vm667_vm15 = vmor %vm665_vm14, %vm666_vm12 }
 0x16e   : > { %719 = vst [vmem:[%s1173_s8 + $0x70] sm:$0xff] %v703_v47  ;;  %v696_v27 = vmul.f32 %v608_v24, %v1155_v55 }
 0x16f   : > { %v683_v22 = vsub.f32 1.5, %v682_v25  ;;  %v662_v30 = vmul.f32 0.5, %v661_v26 }
 0x170   : > { %712 = vst [vmem:[%s1173_s8 + $0x38] sm:$0xff] %v696_v27 }
 0x171   : > { %v684_v31 = vmul.f32 %v906_v13, %v683_v22  ;;  %v663_v32 = vsub.f32 1.5, %v662_v30 }
 0x173   : > { %v688_v33 = vsel %vm687_vm13, %v906_v13, %v684_v31  ;;  %v664_v52 = vmul.f32 %v908_v42, %v663_v32 }
 0x174   : > { %v704_v35 = vmul.f32 %v688_v33, %v1163_v61 }
 0x175   : > { %v668_v36 = vsel %vm667_vm15, %v908_v42, %v664_v52 }
 0x176   : > { %720 = vst [vmem:[%s1173_s8 + $0x78] sm:$0xff] %v704_v35  ;;  %v702_v55 = vmul.f32 %v668_v36, %v1161_v60 }
 0x178   : > { %718 = vst [vmem:[%s1173_s8 + $0x68] sm:$0xff] %v702_v55 }
 0x179 PF: > { %s12_s11 = sadd.s32 1, %s931_s11   ;;  %s1219_s9 = smov %s927_s10 }
 0x17a   : > { %p9_p5 = scmp.ge.s32.totalorder %s12_s11, 4   ;;  %s1220_s10 = smov %s1222_s12 }
 0x17c   :  { %11 = sbr.rel (!%p9_p5) target bundleno = 2 (0x2), region = 69 }

// kernel: mymodel_forward.4
= control target key start
LH: loop header
LB: loop body
LE: loop exit
PB: predicated region body
PF: predicated region fallthrough
CT: control target
= control target key end

     0   :  { %s1195_s12 = smov 0   ;;  %s1197_s13 = smov 0   ;;  %s1732_s0 = inlined_call_operand.vmem [shape: f32[256,256], index: 0, kind: input, shape index: {}]   ;;  %s1733_s1 = inlined_call_operand.vmem [shape: f32[256,256], index: 1, kind: input, shape index: {}]   ;;  %s1734_s2 = inlined_call_operand.vmem [shape: f32[256,128], index: 2, kind: input, shape index: {}]   ;;  %s1735_s3 = inlined_call_operand.vmem [shape: f32[256,128], index: 3, kind: output, shape index: {}]  }
   0x1   :  { %s1199_s14 = smov 0  }
   0x2 LB: > { %s25_s15 = sadd.s32 1, %s1169_s13  ;;  %p1086_p0 = scmp.ge.s32.totalorder %s1173_s14, 1  ;;  %s1173_s14 = sphi %s1199_s14, %s13_s14   ;;  %s1169_s13 = sphi %s1197_s13, %s1737_s13   ;;  %s1165_s12 = sphi %s1195_s12, %s1736_s12  }
   0x3   : > { %p27_p1 = scmp.ge.s32.totalorder %s25_s15, 2  ;;  %p170_p2 = scmp.lt.s32.totalorder %s1173_s14, 3 }
   0x5   : > { %s1739_s15 = smov (%p27_p1, %s25_s15), 0  ;;  %p171_p3 = pnand %p1086_p0, %p170_p2 }
   0x6   : > { %s1087_s25 = sshll.u32 (!%p171_p3), %s1165_s12, 4 }
   0x7   : > { %174 = sbr.rel (%p171_p3) target bundleno = 497 (0x1f1), region = 32  ;;  %p207_p4 = scmp.lt.s32.totalorder (!%p171_p3), %s1087_s25, 31 }
   0xc   : > { %v360_v0 = vld [vmem:[%s1733_s1 + $0xf0] sm:$0xff]  ;;  %v358_v2 = vld [vmem:[%s1733_s1 + $0xe0] sm:$0xff]  ;;  %s1741_s25 = smov (!%p207_p4, %s1087_s25), 31  ;;  %v361_v36 = vld [vmem:[%s1733_s1 + $0xf8] sm:$0xff] }
   0xd   : > { %v392_v1 = vld [vmem:[%s1733_s1 + $0x1f0] sm:$0xff]  ;;  %394 = vmatpush.msra.mxu0 %v360_v0  ;;  %1095 = vmatpush.msra.mxu2 %v360_v0  ;;  %v390_v3 = vld [vmem:[%s1733_s1 + $0x1e0] sm:$0xff]  ;;  %s1094_s24 = sshll.u32 %s1741_s25, 4  ;;  %v393_v37 = vld [vmem:[%s1733_s1 + $0x1f8] sm:$0xff]  ;;  %s1091_s4 = sshll.u32 %s1741_s25, 3 }
   0xe   : > { %459 = vmatpush.msra.mxu1 %v392_v1  ;;  %1111 = vmatpush.msra.mxu3 %v392_v1  ;;  %v356_v4 = vld [vmem:[%s1733_s1 + $0xd0] sm:$0xff]  ;;  %v354_v6 = vld [vmem:[%s1733_s1 + $0xc0] sm:$0xff]  ;;  %s1312_s6 = scalar_lea.vmem %s1732_s0, %s1094_s24  ;;  %v359_v38 = vld [vmem:[%s1733_s1 + $0xe8] sm:$0xff]  ;;  %s1705_s7 = scalar_lea.vmem %s1735_s3, %s1091_s4 }
   0xf   : > { %395 = vmatpush.msra.mxu0 %v358_v2  ;;  %1096 = vmatpush.msra.mxu2 %v358_v2  ;;  %v388_v5 = vld [vmem:[%s1733_s1 + $0x1d0] sm:$0xff]  ;;  %v386_v7 = vld [vmem:[%s1733_s1 + $0x1c0] sm:$0xff]  ;;  %v1327_v34 = vld [vmem:[%s1312_s6 + $0x8] sm:$0xff] }
  0x10   : > { %460 = vmatpush.msra.mxu1 %v390_v3  ;;  %1112 = vmatpush.msra.mxu3 %v390_v3  ;;  %v352_v8 = vld [vmem:[%s1733_s1 + $0xb0] sm:$0xff]  ;;  %v350_v10 = vld [vmem:[%s1733_s1 + $0xa0] sm:$0xff]  ;;  %v1330_v35 = vld [vmem:[%s1312_s6 + $0x88] sm:$0xff] }
  0x11   : > { %396 = vmatpush.msra.mxu0 %v356_v4  ;;  %1097 = vmatpush.msra.mxu2 %v356_v4  ;;  %v384_v9 = vld [vmem:[%s1733_s1 + $0x1b0] sm:$0xff]  ;;  %v382_v11 = vld [vmem:[%s1733_s1 + $0x1a0] sm:$0xff]  ;;  %v391_v39 = vld [vmem:[%s1733_s1 + $0x1e8] sm:$0xff] }
  0x12   : > { %461 = vmatpush.msra.mxu1 %v388_v5  ;;  %1113 = vmatpush.msra.mxu3 %v388_v5  ;;  %v348_v12 = vld [vmem:[%s1733_s1 + $0x90] sm:$0xff]  ;;  %v346_v14 = vld [vmem:[%s1733_s1 + $0x80] sm:$0xff]  ;;  %v357_v40 = vld [vmem:[%s1733_s1 + $0xd8] sm:$0xff] }
  0x13   : > { %397 = vmatpush.msra.mxu0 %v354_v6  ;;  %1098 = vmatpush.msra.mxu2 %v354_v6  ;;  %v380_v13 = vld [vmem:[%s1733_s1 + $0x190] sm:$0xff]  ;;  %v378_v15 = vld [vmem:[%s1733_s1 + $0x180] sm:$0xff]  ;;  %v389_v41 = vld [vmem:[%s1733_s1 + $0x1d8] sm:$0xff] }
  0x14   : > { %462 = vmatpush.msra.mxu1 %v386_v7  ;;  %1114 = vmatpush.msra.mxu3 %v386_v7  ;;  %v344_v16 = vld [vmem:[%s1733_s1 + $0x70] sm:$0xff]  ;;  %v342_v18 = vld [vmem:[%s1733_s1 + $0x60] sm:$0xff]  ;;  %v1361_v44 = vld [vmem:[%s1312_s6 + $0x18] sm:$0xff] }
  0x15   : > { %398 = vmatpush.msra.mxu0 %v352_v8  ;;  %1099 = vmatpush.msra.mxu2 %v352_v8  ;;  %v376_v17 = vld [vmem:[%s1733_s1 + $0x170] sm:$0xff]  ;;  %v374_v19 = vld [vmem:[%s1733_s1 + $0x160] sm:$0xff]  ;;  %v1364_v45 = vld [vmem:[%s1312_s6 + $0x98] sm:$0xff] }
  0x16   : > { %463 = vmatpush.msra.mxu1 %v384_v9  ;;  %1115 = vmatpush.msra.mxu3 %v384_v9  ;;  %v340_v20 = vld [vmem:[%s1733_s1 + $0x50] sm:$0xff]  ;;  %v338_v22 = vld [vmem:[%s1733_s1 + $0x40] sm:$0xff]  ;;  %v355_v46 = vld [vmem:[%s1733_s1 + $0xc8] sm:$0xff] }
  0x17   : > { %399 = vmatpush.msra.mxu0 %v350_v10  ;;  %1100 = vmatpush.msra.mxu2 %v350_v10  ;;  %v372_v21 = vld [vmem:[%s1733_s1 + $0x150] sm:$0xff]  ;;  %v370_v23 = vld [vmem:[%s1733_s1 + $0x140] sm:$0xff]  ;;  %v387_v47 = vld [vmem:[%s1733_s1 + $0x1c8] sm:$0xff] }
  0x18   : > { %464 = vmatpush.msra.mxu1 %v382_v11  ;;  %1116 = vmatpush.msra.mxu3 %v382_v11  ;;  %v336_v24 = vld [vmem:[%s1733_s1 + $0x30] sm:$0xff]  ;;  %v334_v26 = vld [vmem:[%s1733_s1 + $0x20] sm:$0xff]  ;;  %v353_v48 = vld [vmem:[%s1733_s1 + $0xb8] sm:$0xff] }
  0x19   : > { %400 = vmatpush.msra.mxu0 %v348_v12  ;;  %1101 = vmatpush.msra.mxu2 %v348_v12  ;;  %v368_v25 = vld [vmem:[%s1733_s1 + $0x130] sm:$0xff]  ;;  %v366_v27 = vld [vmem:[%s1733_s1 + $0x120] sm:$0xff]  ;;  %v385_v49 = vld [vmem:[%s1733_s1 + $0x1b8] sm:$0xff] }
  0x1a   : > { %465 = vmatpush.msra.mxu1 %v380_v13  ;;  %1117 = vmatpush.msra.mxu3 %v380_v13  ;;  %v332_v28 = vld [vmem:[%s1733_s1 + $0x10] sm:$0xff]  ;;  %v330_v30 = vld [vmem:[%s1733_s1] sm:$0xff]  ;;  %v351_v50 = vld [vmem:[%s1733_s1 + $0xa8] sm:$0xff] }
  0x1b   : > { %401 = vmatpush.msra.mxu0 %v346_v14  ;;  %1102 = vmatpush.msra.mxu2 %v346_v14  ;;  %v364_v29 = vld [vmem:[%s1733_s1 + $0x110] sm:$0xff]  ;;  %v362_v31 = vld [vmem:[%s1733_s1 + $0x100] sm:$0xff]  ;;  %v383_v51 = vld [vmem:[%s1733_s1 + $0x1a8] sm:$0xff] }
  0x1c   : > { %466 = vmatpush.msra.mxu1 %v378_v15  ;;  %1118 = vmatpush.msra.mxu3 %v378_v15  ;;  %v1321_v32 = vld [vmem:[%s1312_s6] sm:$0xff]  ;;  %v1355_v42 = vld [vmem:[%s1312_s6 + $0x10] sm:$0xff]  ;;  %v1395_v54 = vld [vmem:[%s1312_s6 + $0x28] sm:$0xff] }
  0x1d   : > { %402 = vmatpush.msra.mxu0 %v344_v16  ;;  %1103 = vmatpush.msra.mxu2 %v344_v16  ;;  %v1324_v33 = vld [vmem:[%s1312_s6 + $0x80] sm:$0xff]  ;;  %v1358_v43 = vld [vmem:[%s1312_s6 + $0x90] sm:$0xff]  ;;  %v1398_v55 = vld [vmem:[%s1312_s6 + $0xa8] sm:$0xff] }
  0x1e   : > { %467 = vmatpush.msra.mxu1 %v376_v17  ;;  %1119 = vmatpush.msra.mxu3 %v376_v17  ;;  %v1389_v52 = vld [vmem:[%s1312_s6 + $0x20] sm:$0xff]  ;;  %v349_v56 = vld [vmem:[%s1733_s1 + $0x98] sm:$0xff]  ;;  %v347_v58 = vld [vmem:[%s1733_s1 + $0x88] sm:$0xff] }
  0x1f   : > { %403 = vmatpush.msra.mxu0 %v342_v18  ;;  %1104 = vmatpush.msra.mxu2 %v342_v18  ;;  %v1392_v53 = vld [vmem:[%s1312_s6 + $0xa0] sm:$0xff]  ;;  %v381_v57 = vld [vmem:[%s1733_s1 + $0x198] sm:$0xff]  ;;  %v379_v59 = vld [vmem:[%s1733_s1 + $0x188] sm:$0xff] }
  0x20   : > { %468 = vmatpush.msra.mxu1 %v374_v19  ;;  %1120 = vmatpush.msra.mxu3 %v374_v19  ;;  %v345_v60 = vld [vmem:[%s1733_s1 + $0x78] sm:$0xff]  ;;  %v1423_v62 = vld [vmem:[%s1312_s6 + $0x30] sm:$0xff]  ;;  %v343_v2 = vld [vmem:[%s1733_s1 + $0x68] sm:$0xff] }
  0x21   : > { %404 = vmatpush.msra.mxu0 %v340_v20  ;;  %1105 = vmatpush.msra.mxu2 %v340_v20  ;;  %v377_v61 = vld [vmem:[%s1733_s1 + $0x178] sm:$0xff]  ;;  %v1426_v63 = vld [vmem:[%s1312_s6 + $0xb0] sm:$0xff]  ;;  %v375_v3 = vld [vmem:[%s1733_s1 + $0x168] sm:$0xff] }
  0x22   : > { %469 = vmatpush.msra.mxu1 %v372_v21  ;;  %1121 = vmatpush.msra.mxu3 %v372_v21  ;;  %v1429_v0 = vld [vmem:[%s1312_s6 + $0x38] sm:$0xff]  ;;  %v339_v6 = vld [vmem:[%s1733_s1 + $0x48] sm:$0xff]  ;;  %v1457_v8 = vld [vmem:[%s1312_s6 + $0x40] sm:$0xff] }
  0x23   : > { %405 = vmatpush.msra.mxu0 %v338_v22  ;;  %1106 = vmatpush.msra.mxu2 %v338_v22  ;;  %v1432_v1 = vld [vmem:[%s1312_s6 + $0xb8] sm:$0xff]  ;;  %v371_v7 = vld [vmem:[%s1733_s1 + $0x148] sm:$0xff]  ;;  %v1460_v9 = vld [vmem:[%s1312_s6 + $0xc0] sm:$0xff] }
  0x24   : > { %470 = vmatpush.msra.mxu1 %v370_v23  ;;  %1122 = vmatpush.msra.mxu3 %v370_v23  ;;  %v341_v4 = vld [vmem:[%s1733_s1 + $0x58] sm:$0xff]  ;;  %v1463_v10 = vld [vmem:[%s1312_s6 + $0x48] sm:$0xff]  ;;  %v1491_v18 = vld [vmem:[%s1312_s6 + $0x50] sm:$0xff] }
  0x25   : > { %406 = vmatpush.msra.mxu0 %v336_v24  ;;  %1107 = vmatpush.msra.mxu2 %v336_v24  ;;  %v373_v5 = vld [vmem:[%s1733_s1 + $0x158] sm:$0xff]  ;;  %v1466_v11 = vld [vmem:[%s1312_s6 + $0xc8] sm:$0xff]  ;;  %v1494_v19 = vld [vmem:[%s1312_s6 + $0xd0] sm:$0xff] }
  0x26   : > { %471 = vmatpush.msra.mxu1 %v368_v25  ;;  %1123 = vmatpush.msra.mxu3 %v368_v25  ;;  %v337_v12 = vld [vmem:[%s1733_s1 + $0x38] sm:$0xff]  ;;  %v335_v14 = vld [vmem:[%s1733_s1 + $0x28] sm:$0xff]  ;;  %v310_v24 = vld [vmem:[%s1312_s6 + $0x60] sm:$0xff] }
  0x27   : > { %407 = vmatpush.msra.mxu0 %v334_v26  ;;  %1108 = vmatpush.msra.mxu2 %v334_v26  ;;  %v369_v13 = vld [vmem:[%s1733_s1 + $0x138] sm:$0xff]  ;;  %v367_v15 = vld [vmem:[%s1733_s1 + $0x128] sm:$0xff]  ;;  %v1514_v25 = vld [vmem:[%s1312_s6 + $0xe0] sm:$0xff] }
  0x28   : > { %472 = vmatpush.msra.mxu1 %v366_v27  ;;  %1124 = vmatpush.msra.mxu3 %v366_v27  ;;  %v333_v16 = vld [vmem:[%s1733_s1 + $0x18] sm:$0xff]  ;;  %v331_v22 = vld [vmem:[%s1733_s1 + $0x8] sm:$0xff] }
  0x29   : > { %408 = vmatpush.msra.mxu0 %v332_v28  ;;  %1109 = vmatpush.msra.mxu2 %v332_v28  ;;  %v365_v17 = vld [vmem:[%s1733_s1 + $0x118] sm:$0xff]  ;;  %v363_v23 = vld [vmem:[%s1733_s1 + $0x108] sm:$0xff]  ;;  %v312_v28 = vld [vmem:[%s1312_s6 + $0x70] sm:$0xff] }
  0x2a   : > { %473 = vmatpush.msra.mxu1 %v364_v29  ;;  %1125 = vmatpush.msra.mxu3 %v364_v29  ;;  %v1497_v20 = vld [vmem:[%s1312_s6 + $0x58] sm:$0xff]  ;;  %v311_v26 = vld [vmem:[%s1312_s6 + $0x68] sm:$0xff]  ;;  %v1524_v29 = vld [vmem:[%s1312_s6 + $0xf0] sm:$0xff] }
  0x2b   : > { %409 = vmatpush.msra.mxu0 %v330_v30  ;;  %1110 = vmatpush.msra.mxu2 %v330_v30  ;;  %v1500_v21 = vld [vmem:[%s1312_s6 + $0xd8] sm:$0xff]  ;;  %v1518_v27 = vld [vmem:[%s1312_s6 + $0xe8] sm:$0xff] }
  0x2c   : > { %474 = vmatpush.msra.mxu1 %v362_v31  ;;  %1126 = vmatpush.msra.mxu3 %v362_v31  ;;  %v313_v30 = vld [vmem:[%s1312_s6 + $0x78] sm:$0xff] }
  0x2d   : > { %410 = vmatmul.f32.vlgmr.msra.gmra.mxu0 %v1321_v32  ;;  %434 = vmatmul.f32.vlgmr.msra.gmra.mxu2 %v1324_v33  ;;  %v1528_v31 = vld [vmem:[%s1312_s6 + $0xf8] sm:$0xff] }
  0x2e   : > { %475 = vmatmul.f32.vlgmr.msra.gmra.mxu1 %v1327_v34  ;;  %499 = vmatmul.f32.vlgmr.msra.gmra.mxu3 %v1330_v35 }
  0x2f   : > { %524 = vmatpush.msrb.mxu2 %v361_v36  ;;  %589 = vmatpush.msrb.mxu3 %v393_v37  ;;  %v832_v36 = vld [vmem:[%s1734_s2 + $0x78] sm:$0xff]  ;;  %v831_v37 = vld [vmem:[%s1734_s2 + $0x70] sm:$0xff] }
  0x30   : > { %849 = vmatpush.msrb.mxu0 %v832_v36 }
  0x31   : > { %525 = vmatpush.msrb.mxu2 %v359_v38  ;;  %590 = vmatpush.msrb.mxu3 %v391_v39  ;;  %v828_v38 = vld [vmem:[%s1734_s2 + $0x58] sm:$0xff]  ;;  %v827_v39 = vld [vmem:[%s1734_s2 + $0x50] sm:$0xff] }
  0x32   : > { %850 = vmatpush.msrb.mxu0 %v831_v37 }
  0x33   : > { %526 = vmatpush.msrb.mxu2 %v357_v40  ;;  %591 = vmatpush.msrb.mxu3 %v389_v41  ;;  %v826_v40 = vld [vmem:[%s1734_s2 + $0x48] sm:$0xff]  ;;  %v825_v41 = vld [vmem:[%s1734_s2 + $0x40] sm:$0xff] }
  0x35   : > { %413 = vmatmul.f32.gmra.mxu0 %v1355_v42  ;;  %437 = vmatmul.f32.gmra.mxu2 %v1358_v43 }
  0x36   : > { %478 = vmatmul.f32.gmra.mxu1 %v1361_v44  ;;  %502 = vmatmul.f32.gmra.mxu3 %v1364_v45 }
  0x37   : > { %527 = vmatpush.msrb.mxu2 %v355_v46  ;;  %592 = vmatpush.msrb.mxu3 %v387_v47  ;;  %v822_v46 = vld [vmem:[%s1734_s2 + $0x28] sm:$0xff]  ;;  %v821_v47 = vld [vmem:[%s1734_s2 + $0x20] sm:$0xff] }
  0x39   : > { %528 = vmatpush.msrb.mxu2 %v353_v48  ;;  %593 = vmatpush.msrb.mxu3 %v385_v49  ;;  %v820_v48 = vld [vmem:[%s1734_s2 + $0x18] sm:$0xff]  ;;  %v819_v49 = vld [vmem:[%s1734_s2 + $0x10] sm:$0xff] }
  0x3b   : > { %529 = vmatpush.msrb.mxu2 %v351_v50  ;;  %594 = vmatpush.msrb.mxu3 %v383_v51  ;;  %v818_v50 = vld [vmem:[%s1734_s2 + $0x8] sm:$0xff]  ;;  %v817_v51 = vld [vmem:[%s1734_s2] sm:$0xff] }
  0x3d   : > { %416 = vmatmul.f32.gmra.mxu0 %v1389_v52  ;;  %440 = vmatmul.f32.gmra.mxu2 %v1392_v53 }
  0x3e   : > { %481 = vmatmul.f32.gmra.mxu1 %v1395_v54  ;;  %505 = vmatmul.f32.gmra.mxu3 %v1398_v55 }
  0x3f   : > { %530 = vmatpush.msrb.mxu2 %v349_v56  ;;  %595 = vmatpush.msrb.mxu3 %v381_v57  ;;  %v846_v56 = vld [vmem:[%s1734_s2 + $0xe8] sm:$0xff]  ;;  %v845_v57 = vld [vmem:[%s1734_s2 + $0xe0] sm:$0xff] }
  0x41   : > { %531 = vmatpush.msrb.mxu2 %v347_v58  ;;  %596 = vmatpush.msrb.mxu3 %v379_v59  ;;  %v844_v58 = vld [vmem:[%s1734_s2 + $0xd8] sm:$0xff] }
  0x43   : > { %532 = vmatpush.msrb.mxu2 %v345_v60  ;;  %597 = vmatpush.msrb.mxu3 %v377_v61 }
  0x45   : > { %419 = vmatmul.f32.gmra.mxu0 %v1423_v62  ;;  %443 = vmatmul.f32.gmra.mxu2 %v1426_v63 }
  0x46   : > { %484 = vmatmul.f32.gmra.mxu1 %v1429_v0  ;;  %508 = vmatmul.f32.gmra.mxu3 %v1432_v1 }
  0x47   : > { %533 = vmatpush.msrb.mxu2 %v343_v2  ;;  %598 = vmatpush.msrb.mxu3 %v375_v3  ;;  %v842_v2 = vld [vmem:[%s1734_s2 + $0xc8] sm:$0xff] }
  0x49   : > { %534 = vmatpush.msrb.mxu2 %v341_v4  ;;  %599 = vmatpush.msrb.mxu3 %v373_v5 }
  0x4b   : > { %535 = vmatpush.msrb.mxu2 %v339_v6  ;;  %600 = vmatpush.msrb.mxu3 %v371_v7 }
  0x4d   : > { %422 = vmatmul.f32.gmra.mxu0 %v1457_v8  ;;  %446 = vmatmul.f32.gmra.mxu2 %v1460_v9 }
  0x4e   : > { %487 = vmatmul.f32.gmra.mxu1 %v1463_v10  ;;  %511 = vmatmul.f32.gmra.mxu3 %v1466_v11 }
  0x4f   : > { %536 = vmatpush.msrb.mxu2 %v337_v12  ;;  %601 = vmatpush.msrb.mxu3 %v369_v13 }
  0x51   : > { %537 = vmatpush.msrb.mxu2 %v335_v14  ;;  %602 = vmatpush.msrb.mxu3 %v367_v15 }
  0x53   : > { %538 = vmatpush.msrb.mxu2 %v333_v16  ;;  %603 = vmatpush.msrb.mxu3 %v365_v17  ;;  %v839_v17 = vld [vmem:[%s1734_s2 + $0xb0] sm:$0xff] }
  0x55   : > { %425 = vmatmul.f32.gmra.mxu0 %v1491_v18  ;;  %449 = vmatmul.f32.gmra.mxu2 %v1494_v19 }
  0x56   : > { %490 = vmatmul.f32.gmra.mxu1 %v1497_v20  ;;  %514 = vmatmul.f32.gmra.mxu3 %v1500_v21 }
  0x57   : > { %539 = vmatpush.msrb.mxu2 %v331_v22  ;;  %604 = vmatpush.msrb.mxu3 %v363_v23 }
  0x5d   : > { %428 = vmatmul.f32.gmra.mxu0 %v310_v24  ;;  %452 = vmatmul.f32.gmra.mxu2 %v1514_v25 }
  0x5e   : > { %493 = vmatmul.f32.gmra.mxu1 %v311_v26  ;;  %517 = vmatmul.f32.gmra.mxu3 %v1518_v27 }
  0x65   : > { %431 = vmatmul.f32.gmra.mxu0 %v312_v28  ;;  %455 = vmatmul.f32.gmra.mxu2 %v1524_v29 }
  0x66   : > { %496 = vmatmul.f32.gmra.mxu1 %v313_v30  ;;  %520 = vmatmul.f32.gmra.mxu3 %v1528_v31 }
  0x6d   : > { %540 = vmatmul.f32.vlgmr.msrb.gmra.mxu2 %v1321_v32  ;;  %v830_v32 = vld [vmem:[%s1734_s2 + $0x68] sm:$0xff] }
  0x6e   : > { %605 = vmatmul.f32.vlgmr.msrb.gmra.mxu3 %v1327_v34  ;;  %v829_v34 = vld [vmem:[%s1734_s2 + $0x60] sm:$0xff]  ;;  %851 = vmatpush.msrb.mxu0 %v830_v32 }
  0x70   : > { %852 = vmatpush.msrb.mxu0 %v829_v34 }
  0x72   : > { %853 = vmatpush.msrb.mxu0 %v828_v38 }
  0x74   : > { %854 = vmatpush.msrb.mxu0 %v827_v39  ;;  %v834_v39 = vld [vmem:[%s1734_s2 + $0x88] sm:$0xff] }
  0x75   : > { %543 = vmatmul.f32.gmra.mxu2 %v1355_v42  ;;  %v824_v42 = vld [vmem:[%s1734_s2 + $0x38] sm:$0xff] }
  0x76   : > { %608 = vmatmul.f32.gmra.mxu3 %v1361_v44  ;;  %855 = vmatpush.msrb.mxu0 %v826_v40  ;;  %v823_v44 = vld [vmem:[%s1734_s2 + $0x30] sm:$0xff] }
  0x78   : > { %856 = vmatpush.msrb.mxu0 %v825_v41 }
  0x7a   : > { %857 = vmatpush.msrb.mxu0 %v824_v42 }
  0x7c   : > { %858 = vmatpush.msrb.mxu0 %v823_v44 }
  0x7d   : > { %546 = vmatmul.f32.gmra.mxu2 %v1389_v52  ;;  %v848_v52 = vld [vmem:[%s1734_s2 + $0xf8] sm:$0xff] }
  0x7e   : > { %611 = vmatmul.f32.gmra.mxu3 %v1395_v54  ;;  %859 = vmatpush.msrb.mxu0 %v822_v46  ;;  %v847_v54 = vld [vmem:[%s1734_s2 + $0xf0] sm:$0xff] }
  0x7f   : > { %914 = vmatpush.msrb.mxu1 %v848_v52 }
  0x80   : > { %860 = vmatpush.msrb.mxu0 %v821_v47 }
  0x81   : > { %915 = vmatpush.msrb.mxu1 %v847_v54 }
  0x82   : > { %861 = vmatpush.msrb.mxu0 %v820_v48 }
  0x83   : > { %916 = vmatpush.msrb.mxu1 %v846_v56 }
  0x84   : > { %862 = vmatpush.msrb.mxu0 %v819_v49 }
  0x85   : > { %549 = vmatmul.f32.gmra.mxu2 %v1423_v62  ;;  %917 = vmatpush.msrb.mxu1 %v845_v57 }
  0x86   : > { %614 = vmatmul.f32.gmra.mxu3 %v1429_v0  ;;  %863 = vmatpush.msrb.mxu0 %v818_v50  ;;  %v843_v0 = vld [vmem:[%s1734_s2 + $0xd0] sm:$0xff] }
  0x87   : > { %918 = vmatpush.msrb.mxu1 %v844_v58 }
  0x88   : > { %864 = vmatpush.msrb.mxu0 %v817_v51 }
  0x89   : > { %919 = vmatpush.msrb.mxu1 %v843_v0 }
  0x8b   : > { %920 = vmatpush.msrb.mxu1 %v842_v2 }
  0x8d   : > { %552 = vmatmul.f32.gmra.mxu2 %v1457_v8  ;;  %v841_v8 = vld [vmem:[%s1734_s2 + $0xc0] sm:$0xff] }
  0x8e   : > { %617 = vmatmul.f32.gmra.mxu3 %v1463_v10  ;;  %v840_v10 = vld [vmem:[%s1734_s2 + $0xb8] sm:$0xff]  ;;  %921 = vmatpush.msrb.mxu1 %v841_v8 }
  0x90   : > { %922 = vmatpush.msrb.mxu1 %v840_v10 }
  0x92   : > { %923 = vmatpush.msrb.mxu1 %v839_v17 }
  0x95   : > { %555 = vmatmul.f32.gmra.mxu2 %v1491_v18  ;;  %v838_v18 = vld [vmem:[%s1734_s2 + $0xa8] sm:$0xff] }
  0x96   : > { %620 = vmatmul.f32.gmra.mxu3 %v1497_v20  ;;  %924 = vmatpush.msrb.mxu1 %v838_v18 }
  0x9d   : > { %558 = vmatmul.f32.gmra.mxu2 %v310_v24 }
  0x9e   : > { %623 = vmatmul.f32.gmra.mxu3 %v311_v26 }
  0xa5   : > { %561 = vmatmul.f32.gmra.mxu2 %v312_v28  ;;  %v837_v28 = vld [vmem:[%s1734_s2 + $0xa0] sm:$0xff] }
  0xa6   : > { %626 = vmatmul.f32.gmra.mxu3 %v313_v30  ;;  %v836_v30 = vld [vmem:[%s1734_s2 + $0x98] sm:$0xff]  ;;  %925 = vmatpush.msrb.mxu1 %v837_v28 }
  0xa8   : > { %926 = vmatpush.msrb.mxu1 %v836_v30 }
  0xaa   : > { %v411_v59 = vpop.f32.mrf.mxu0 }
  0xab   : > { %v476_v60 = vpop.f32.mrf.mxu1 }
  0xac   : > { %v477_v61 = vadd.f32 %v476_v60, %v411_v59 }
  0xad   : > { %564 = vmatmul.f32.gmra.mxu2 %v1324_v33 }
  0xae   : > { %v753_v62 = vmul.f32 0.01, %v477_v61  ;;  %629 = vmatmul.f32.gmra.mxu3 %v1330_v35 }
  0xb0   : > { %v785_v3 = vmax.f32 %v477_v61, %v753_v62  ;;  %v1615_v4 = vpop.f32.mrf.mxu2 }
  0xb1   : > { %v1617_v5 = vpop.f32.mrf.mxu3 }
  0xb2   : > { %865 = vmatmul.f32.vlgmr.msrb.gmra.mxu0 %v785_v3  ;;  %v414_v33 = vpop.f32.mrf.mxu0 }
  0xb3   : > { %v479_v6 = vpop.f32.mrf.mxu1 }
  0xb4   : > { %v480_v7 = vadd.f32 %v479_v6, %v414_v33 }
  0xb5   : > { %567 = vmatmul.f32.gmra.mxu2 %v1358_v43 }
  0xb6   : > { %v755_v35 = vmul.f32 0.01, %v480_v7  ;;  %632 = vmatmul.f32.gmra.mxu3 %v1364_v45 }
  0xb8   : > { %v1627_v12 = vpop.f32.mrf.mxu2  ;;  %v787_v13 = vmax.f32 %v480_v7, %v755_v35 }
  0xb9   : > { %v1629_v14 = vpop.f32.mrf.mxu3 }
  0xba   : > { %868 = vmatmul.f32.gmra.mxu0 %v787_v13  ;;  %v417_v43 = vpop.f32.mrf.mxu0  ;;  %v504_v33 = vadd.f32 %v1629_v14, %v1627_v12 }
  0xbb   : > { %v482_v15 = vpop.f32.mrf.mxu1 }
  0xbc   : > { %v483_v16 = vadd.f32 %v482_v15, %v417_v43 }
  0xbd   : > { %570 = vmatmul.f32.gmra.mxu2 %v1392_v53 }
  0xbe   : > { %v757_v45 = vmul.f32 0.01, %v483_v16  ;;  %635 = vmatmul.f32.gmra.mxu3 %v1398_v55 }
  0xc0   : > { %v1639_v20 = vpop.f32.mrf.mxu2  ;;  %v789_v22 = vmax.f32 %v483_v16, %v757_v45 }
  0xc1   : > { %v1641_v23 = vpop.f32.mrf.mxu3 }
  0xc2   : > { %871 = vmatmul.f32.gmra.mxu0 %v789_v22  ;;  %v420_v53 = vpop.f32.mrf.mxu0 }
  0xc3   : > { %v485_v24 = vpop.f32.mrf.mxu1 }
  0xc4   : > { %v486_v26 = vadd.f32 %v485_v24, %v420_v53 }
  0xc5   : > { %573 = vmatmul.f32.gmra.mxu2 %v1426_v63 }
  0xc6   : > { %v759_v55 = vmul.f32 0.01, %v486_v26  ;;  %638 = vmatmul.f32.gmra.mxu3 %v1432_v1  ;;  %v835_v1 = vld [vmem:[%s1734_s2 + $0x90] sm:$0xff] }
  0xc7   : > { %927 = vmatpush.msrb.mxu1 %v835_v1 }
  0xc8   : > { %v1651_v36 = vpop.f32.mrf.mxu2  ;;  %v791_v37 = vmax.f32 %v486_v26, %v759_v55 }
  0xc9   : > { %v1653_v32 = vpop.f32.mrf.mxu3  ;;  %928 = vmatpush.msrb.mxu1 %v834_v39 }
  0xca   : > { %874 = vmatmul.f32.gmra.mxu0 %v791_v37  ;;  %v423_v63 = vpop.f32.mrf.mxu0  ;;  %v510_v14 = vadd.f32 %v1653_v32, %v1651_v36 }
  0xcb   : > { %v488_v34 = vpop.f32.mrf.mxu1 }
  0xcc   : > { %v489_v38 = vadd.f32 %v488_v34, %v423_v63  ;;  %v775_v24 = vmul.f32 0.01, %v510_v14 }
  0xcd   : > { %576 = vmatmul.f32.gmra.mxu2 %v1460_v9  ;;  %v833_v9 = vld [vmem:[%s1734_s2 + $0x80] sm:$0xff] }
  0xce   : > { %v761_v40 = vmul.f32 0.01, %v489_v38  ;;  %641 = vmatmul.f32.gmra.mxu3 %v1466_v11  ;;  %929 = vmatpush.msrb.mxu1 %v833_v9  ;;  %v807_v28 = vmax.f32 %v510_v14, %v775_v24 }
  0xd0   : > { %v1663_v41 = vpop.f32.mrf.mxu2  ;;  %v793_v42 = vmax.f32 %v489_v38, %v761_v40 }
  0xd1   : > { %v1665_v44 = vpop.f32.mrf.mxu3 }
  0xd2   : > { %877 = vmatmul.f32.gmra.mxu0 %v793_v42  ;;  %v426_v46 = vpop.f32.mrf.mxu0  ;;  %v513_v26 = vadd.f32 %v1665_v44, %v1663_v41 }
  0xd3   : > { %v491_v47 = vpop.f32.mrf.mxu1 }
  0xd4   : > { %v492_v48 = vadd.f32 %v491_v47, %v426_v46  ;;  %v777_v63 = vmul.f32 0.01, %v513_v26 }
  0xd5   : > { %579 = vmatmul.f32.gmra.mxu2 %v1494_v19 }
  0xd6   : > { %v763_v49 = vmul.f32 0.01, %v492_v48  ;;  %644 = vmatmul.f32.gmra.mxu3 %v1500_v21  ;;  %v809_v1 = vmax.f32 %v513_v26, %v777_v63 }
  0xd8   : > { %v1672_v11 = vpop.f32.mrf.mxu2  ;;  %v795_v50 = vmax.f32 %v492_v48, %v763_v49 }
  0xd9   : > { %v1674_v51 = vpop.f32.mrf.mxu3 }
  0xda   : > { %880 = vmatmul.f32.gmra.mxu0 %v795_v50  ;;  %v429_v52 = vpop.f32.mrf.mxu0  ;;  %v516_v34 = vadd.f32 %v1674_v51, %v1672_v11 }
  0xdb   : > { %v494_v54 = vpop.f32.mrf.mxu1 }
  0xdc   : > { %v495_v56 = vadd.f32 %v494_v54, %v429_v52  ;;  %v779_v42 = vmul.f32 0.01, %v516_v34 }
  0xdd   : > { %582 = vmatmul.f32.gmra.mxu2 %v1514_v25  ;;  %v501_v25 = vadd.f32 %v1617_v5, %v1615_v4  ;;  %v507_v4 = vadd.f32 %v1641_v23, %v1639_v20 }
  0xde   : > { %v765_v19 = vmul.f32 0.01, %v495_v56  ;;  %647 = vmatmul.f32.gmra.mxu3 %v1518_v27  ;;  %v811_v48 = vmax.f32 %v516_v34, %v779_v42 }
  0xdf   : > { %v769_v3 = vmul.f32 0.01, %v501_v25  ;;  %v773_v16 = vmul.f32 0.01, %v507_v4 }
  0xe0   : > { %v1678_v21 = vpop.f32.mrf.mxu2  ;;  %v797_v57 = vmax.f32 %v495_v56, %v765_v19 }
  0xe1   : > { %v1680_v58 = vpop.f32.mrf.mxu3  ;;  %v801_v7 = vmax.f32 %v501_v25, %v769_v3  ;;  %v805_v18 = vmax.f32 %v507_v4, %v773_v16 }
  0xe2   : > { %883 = vmatmul.f32.gmra.mxu0 %v797_v57  ;;  %v432_v59 = vpop.f32.mrf.mxu0  ;;  %v519_v46 = vadd.f32 %v1680_v58, %v1678_v21 }
  0xe3   : > { %v497_v60 = vpop.f32.mrf.mxu1 }
  0xe4   : > { %v498_v61 = vadd.f32 %v497_v60, %v432_v59  ;;  %v781_v50 = vmul.f32 0.01, %v519_v46 }
  0xe5   : > { %585 = vmatmul.f32.gmra.mxu2 %v1524_v29  ;;  %v771_v29 = vmul.f32 0.01, %v504_v33 }
  0xe6   : > { %v767_v62 = vmul.f32 0.01, %v498_v61  ;;  %650 = vmatmul.f32.gmra.mxu3 %v1528_v31  ;;  %v813_v56 = vmax.f32 %v519_v46, %v781_v50 }
  0xe7   : > { %v803_v13 = vmax.f32 %v504_v33, %v771_v29 }
  0xe8   : > { %v1686_v0 = vpop.f32.mrf.mxu2  ;;  %v799_v27 = vmax.f32 %v498_v61, %v767_v62 }
  0xe9   : > { %v521_v2 = vpop.f32.mrf.mxu3 }
  0xea   : > { %886 = vmatmul.f32.gmra.mxu0 %v799_v27  ;;  %v522_v52 = vadd.f32 %v521_v2, %v1686_v0 }
  0xec   : > { %v783_v59 = vmul.f32 0.01, %v522_v52 }
  0xee   : > { %v815_v61 = vmax.f32 %v522_v52, %v783_v59 }
  0xf0   : > { %v541_v6 = vpop.f32.mrf.mxu2 }
  0xf1   : > { %v606_v35 = vpop.f32.mrf.mxu3 }
  0xf2   : > { %v607_v8 = vadd.f32 %v606_v35, %v541_v6  ;;  %889 = vmatmul.f32.gmra.mxu0 %v801_v7 }
  0xf4   : > { %v754_v10 = vmul.f32 0.01, %v607_v8 }
  0xf6   : > { %v786_v31 = vmax.f32 %v607_v8, %v754_v10 }
  0xf8   : > { %930 = vmatmul.f32.vlgmr.msrb.gmra.mxu1 %v786_v31  ;;  %v544_v5 = vpop.f32.mrf.mxu2 }
  0xf9   : > { %v609_v43 = vpop.f32.mrf.mxu3 }
  0xfa   : > { %v610_v15 = vadd.f32 %v609_v43, %v544_v5  ;;  %892 = vmatmul.f32.gmra.mxu0 %v803_v13 }
  0xfc   : > { %v756_v45 = vmul.f32 0.01, %v610_v15 }
  0xfe   : > { %v788_v12 = vmax.f32 %v610_v15, %v756_v45 }
 0x100   : > { %933 = vmatmul.f32.gmra.mxu1 %v788_v12  ;;  %v547_v17 = vpop.f32.mrf.mxu2 }
 0x101   : > { %v612_v22 = vpop.f32.mrf.mxu3 }
 0x102   : > { %v613_v53 = vadd.f32 %v612_v22, %v547_v17  ;;  %895 = vmatmul.f32.gmra.mxu0 %v805_v18 }
 0x104   : > { %v758_v20 = vmul.f32 0.01, %v613_v53 }
 0x106   : > { %v790_v23 = vmax.f32 %v613_v53, %v758_v20 }
 0x108   : > { %936 = vmatmul.f32.gmra.mxu1 %v790_v23  ;;  %v550_v55 = vpop.f32.mrf.mxu2 }
 0x109   : > { %v615_v30 = vpop.f32.mrf.mxu3 }
 0x10a   : > { %v616_v37 = vadd.f32 %v615_v30, %v550_v55  ;;  %898 = vmatmul.f32.gmra.mxu0 %v807_v28 }
 0x10c   : > { %v760_v36 = vmul.f32 0.01, %v616_v37 }
 0x10e   : > { %v792_v32 = vmax.f32 %v616_v37, %v760_v36 }
 0x110   : > { %939 = vmatmul.f32.gmra.mxu1 %v792_v32  ;;  %v553_v38 = vpop.f32.mrf.mxu2 }
 0x111   : > { %v618_v39 = vpop.f32.mrf.mxu3 }
 0x112   : > { %v619_v40 = vadd.f32 %v618_v39, %v553_v38  ;;  %901 = vmatmul.f32.gmra.mxu0 %v809_v1 }
 0x114   : > { %v762_v41 = vmul.f32 0.01, %v619_v40 }
 0x116   : > { %v794_v44 = vmax.f32 %v619_v40, %v762_v41 }
 0x118   : > { %942 = vmatmul.f32.gmra.mxu1 %v794_v44  ;;  %v556_v47 = vpop.f32.mrf.mxu2 }
 0x119   : > { %v621_v49 = vpop.f32.mrf.mxu3 }
 0x11a   : > { %v622_v9 = vadd.f32 %v621_v49, %v556_v47  ;;  %904 = vmatmul.f32.gmra.mxu0 %v811_v48 }
 0x11c   : > { %v764_v11 = vmul.f32 0.01, %v622_v9 }
 0x11e   : > { %v796_v51 = vmax.f32 %v622_v9, %v764_v11 }
 0x120   : > { %945 = vmatmul.f32.gmra.mxu1 %v796_v51  ;;  %v559_v54 = vpop.f32.mrf.mxu2 }
 0x121   : > { %v624_v19 = vpop.f32.mrf.mxu3 }
 0x122   : > { %v625_v57 = vadd.f32 %v624_v19, %v559_v54  ;;  %907 = vmatmul.f32.gmra.mxu0 %v813_v56 }
 0x124   : > { %v766_v60 = vmul.f32 0.01, %v625_v57 }
 0x126   : > { %v798_v21 = vmax.f32 %v625_v57, %v766_v60 }
 0x128   : > { %948 = vmatmul.f32.gmra.mxu1 %v798_v21  ;;  %v562_v58 = vpop.f32.mrf.mxu2 }
 0x129   : > { %v627_v62 = vpop.f32.mrf.mxu3 }
 0x12a   : > { %v628_v25 = vadd.f32 %v627_v62, %v562_v58  ;;  %910 = vmatmul.f32.gmra.mxu0 %v815_v61 }
 0x12c   : > { %v768_v27 = vmul.f32 0.01, %v628_v25 }
 0x12e   : > { %v800_v3 = vmax.f32 %v628_v25, %v768_v27 }
 0x12f   : > { %v866_v23 = vpop.f32.mrf.mxu0 }
 0x130   : > { %951 = vmatmul.f32.gmra.mxu1 %v800_v3  ;;  %v565_v33 = vpop.f32.mrf.mxu2 }
 0x131   : > { %v630_v0 = vpop.f32.mrf.mxu3 }
 0x132   : > { %v631_v2 = vadd.f32 %v630_v0, %v565_v33 }
 0x134   : > { %v770_v6 = vmul.f32 0.01, %v631_v2 }
 0x136   : > { %v802_v7 = vmax.f32 %v631_v2, %v770_v6 }
 0x137   : > { %v869_v36 = vpop.f32.mrf.mxu0 }
 0x138   : > { %954 = vmatmul.f32.gmra.mxu1 %v802_v7  ;;  %v568_v35 = vpop.f32.mrf.mxu2 }
 0x139   : > { %v633_v8 = vpop.f32.mrf.mxu3 }
 0x13a   : > { %v634_v29 = vadd.f32 %v633_v8, %v568_v35 }
 0x13c   : > { %v772_v10 = vmul.f32 0.01, %v634_v29 }
 0x13e   : > { %v804_v31 = vmax.f32 %v634_v29, %v772_v10 }
 0x13f   : > { %v872_v41 = vpop.f32.mrf.mxu0 }
 0x140   : > { %957 = vmatmul.f32.gmra.mxu1 %v804_v31  ;;  %v571_v4 = vpop.f32.mrf.mxu2 }
 0x141   : > { %v636_v5 = vpop.f32.mrf.mxu3 }
 0x142   : > { %v637_v13 = vadd.f32 %v636_v5, %v571_v4 }
 0x144   : > { %v774_v43 = vmul.f32 0.01, %v637_v13 }
 0x146   : > { %v806_v15 = vmax.f32 %v637_v13, %v774_v43 }
 0x147   : > { %v875_v47 = vpop.f32.mrf.mxu0 }
 0x148   : > { %960 = vmatmul.f32.gmra.mxu1 %v806_v15  ;;  %v574_v16 = vpop.f32.mrf.mxu2 }
 0x149   : > { %v639_v45 = vpop.f32.mrf.mxu3 }
 0x14a   : > { %v640_v12 = vadd.f32 %v639_v45, %v574_v16 }
 0x14c   : > { %v776_v14 = vmul.f32 0.01, %v640_v12 }
 0x14e   : > { %v808_v17 = vmax.f32 %v640_v12, %v776_v14 }
 0x14f   : > { %v878_v11 = vpop.f32.mrf.mxu0 }
 0x150   : > { %963 = vmatmul.f32.gmra.mxu1 %v808_v17  ;;  %v577_v18 = vpop.f32.mrf.mxu2 }
 0x151   : > { %v642_v22 = vpop.f32.mrf.mxu3 }
 0x152   : > { %v643_v53 = vadd.f32 %v642_v22, %v577_v18 }
 0x154   : > { %v778_v24 = vmul.f32 0.01, %v643_v53 }
 0x156   : > { %v810_v20 = vmax.f32 %v643_v53, %v778_v24 }
 0x157   : > { %v881_v54 = vpop.f32.mrf.mxu0 }
 0x158   : > { %966 = vmatmul.f32.gmra.mxu1 %v810_v20  ;;  %v580_v26 = vpop.f32.mrf.mxu2 }
 0x159   : > { %v645_v55 = vpop.f32.mrf.mxu3 }
 0x15a   : > { %v646_v28 = vadd.f32 %v645_v55, %v580_v26 }
 0x15c   : > { %v780_v30 = vmul.f32 0.01, %v646_v28 }
 0x15e   : > { %v812_v37 = vmax.f32 %v646_v28, %v780_v30 }
 0x15f   : > { %v884_v57 = vpop.f32.mrf.mxu0 }
 0x160   : > { %969 = vmatmul.f32.gmra.mxu1 %v812_v37  ;;  %v583_v63 = vpop.f32.mrf.mxu2 }
 0x161   : > { %v648_v32 = vpop.f32.mrf.mxu3 }
 0x162   : > { %v649_v34 = vadd.f32 %v648_v32, %v583_v63 }
 0x164   : > { %v782_v38 = vmul.f32 0.01, %v649_v34 }
 0x166   : > { %v814_v1 = vmax.f32 %v649_v34, %v782_v38 }
 0x167   : > { %v887_v21 = vpop.f32.mrf.mxu0 }
 0x168   : > { %972 = vmatmul.f32.gmra.mxu1 %v814_v1  ;;  %v586_v39 = vpop.f32.mrf.mxu2 }
 0x169   : > { %v651_v40 = vpop.f32.mrf.mxu3 }
 0x16a   : > { %v652_v42 = vadd.f32 %v651_v40, %v586_v39 }
 0x16c   : > { %v784_v44 = vmul.f32 0.01, %v652_v42 }
 0x16e   : > { %v816_v46 = vmax.f32 %v652_v42, %v784_v44 }
 0x16f   : > { %v890_v27 = vpop.f32.mrf.mxu0 }
 0x170   : > { %975 = vmatmul.f32.gmra.mxu1 %v816_v46 }
 0x175   : > { %v931_v48 = vpop.f32.mrf.mxu1 }
 0x176   : > { %v932_v49 = vadd.f32 %v931_v48, %v866_v23 }
 0x177   : > { %v893_v0 = vpop.f32.mrf.mxu0 }
 0x178   : > { %979 = vst [vmem:[%s1705_s7] sm:$0xff] %v932_v49 }
 0x17d   : > { %v934_v9 = vpop.f32.mrf.mxu1 }
 0x17e   : > { %v935_v50 = vadd.f32 %v934_v9, %v869_v36 }
 0x17f   : > { %v896_v7 = vpop.f32.mrf.mxu0 }
 0x180   : > { %980 = vst [vmem:[%s1705_s7 + $0x8] sm:$0xff] %v935_v50 }
 0x185   : > { %v937_v51 = vpop.f32.mrf.mxu1 }
 0x186   : > { %v938_v52 = vadd.f32 %v937_v51, %v872_v41 }
 0x187   : > { %v899_v29 = vpop.f32.mrf.mxu0 }
 0x188   : > { %981 = vst [vmem:[%s1705_s7 + $0x10] sm:$0xff] %v938_v52 }
 0x18d   : > { %v940_v56 = vpop.f32.mrf.mxu1 }
 0x18e   : > { %v941_v19 = vadd.f32 %v940_v56, %v875_v47 }
 0x18f   : > { %v902_v13 = vpop.f32.mrf.mxu0 }
 0x190   : > { %982 = vst [vmem:[%s1705_s7 + $0x18] sm:$0xff] %v941_v19 }
 0x195   : > { %v943_v59 = vpop.f32.mrf.mxu1 }
 0x196   : > { %v944_v60 = vadd.f32 %v943_v59, %v878_v11 }
 0x197   : > { %v905_v16 = vpop.f32.mrf.mxu0 }
 0x198   : > { %983 = vst [vmem:[%s1705_s7 + $0x20] sm:$0xff] %v944_v60 }
 0x19d   : > { %v946_v58 = vpop.f32.mrf.mxu1 }
 0x19e   : > { %v947_v61 = vadd.f32 %v946_v58, %v881_v54 }
 0x19f   : > { %v908_v14 = vpop.f32.mrf.mxu0 }
 0x1a0   : > { %984 = vst [vmem:[%s1705_s7 + $0x28] sm:$0xff] %v947_v61 }
 0x1a5   : > { %v949_v62 = vpop.f32.mrf.mxu1 }
 0x1a6   : > { %v950_v25 = vadd.f32 %v949_v62, %v884_v57 }
 0x1a7   : > { %v911_v22 = vpop.f32.mrf.mxu0 }
 0x1a8   : > { %985 = vst [vmem:[%s1705_s7 + $0x30] sm:$0xff] %v950_v25 }
 0x1ad   : > { %v952_v3 = vpop.f32.mrf.mxu1 }
 0x1ae   : > { %v953_v33 = vadd.f32 %v952_v3, %v887_v21 }
 0x1b0   : > { %986 = vst [vmem:[%s1705_s7 + $0x38] sm:$0xff] %v953_v33 }
 0x1b5   : > { %v955_v2 = vpop.f32.mrf.mxu1 }
 0x1b6   : > { %v956_v6 = vadd.f32 %v955_v2, %v890_v27 }
 0x1b8   : > { %987 = vst [vmem:[%s1705_s7 + $0x40] sm:$0xff] %v956_v6 }
 0x1bd   : > { %v958_v35 = vpop.f32.mrf.mxu1 }
 0x1be   : > { %v959_v8 = vadd.f32 %v958_v35, %v893_v0 }
 0x1c0   : > { %988 = vst [vmem:[%s1705_s7 + $0x48] sm:$0xff] %v959_v8 }
 0x1c5   : > { %v961_v10 = vpop.f32.mrf.mxu1 }
 0x1c6   : > { %v962_v31 = vadd.f32 %v961_v10, %v896_v7 }
 0x1c8   : > { %989 = vst [vmem:[%s1705_s7 + $0x50] sm:$0xff] %v962_v31 }
 0x1cd   : > { %v964_v4 = vpop.f32.mrf.mxu1 }
 0x1ce   : > { %v965_v5 = vadd.f32 %v964_v4, %v899_v29 }
 0x1d0   : > { %990 = vst [vmem:[%s1705_s7 + $0x58] sm:$0xff] %v965_v5 }
 0x1d5   : > { %v967_v43 = vpop.f32.mrf.mxu1 }
 0x1d6   : > { %v968_v15 = vadd.f32 %v967_v43, %v902_v13 }
 0x1d8   : > { %991 = vst [vmem:[%s1705_s7 + $0x60] sm:$0xff] %v968_v15 }
 0x1dd   : > { %v970_v45 = vpop.f32.mrf.mxu1 }
 0x1de   : > { %v971_v12 = vadd.f32 %v970_v45, %v905_v16 }
 0x1e0   : > { %992 = vst [vmem:[%s1705_s7 + $0x68] sm:$0xff] %v971_v12 }
 0x1e5   : > { %v973_v17 = vpop.f32.mrf.mxu1 }
 0x1e6   : > { %v974_v18 = vadd.f32 %v973_v17, %v908_v14 }
 0x1e8   : > { %993 = vst [vmem:[%s1705_s7 + $0x70] sm:$0xff] %v974_v18 }
 0x1ed   : > { %v976_v53 = vpop.f32.mrf.mxu1 }
 0x1ee   : > { %v977_v24 = vadd.f32 %v976_v53, %v911_v22 }
 0x1f0   : > { %994 = vst [vmem:[%s1705_s7 + $0x78] sm:$0xff] %v977_v24 }
 0x1f1 PF: > { %s13_s14 = sadd.s32 1, %s1173_s14   ;;  %s1736_s12 = smov %s1169_s13 }
 0x1f2   : > { %p10_p5 = scmp.ge.s32.totalorder %s13_s14, 4   ;;  %s1737_s13 = smov %s1739_s15 }
 0x1f4   :  { %12 = sbr.rel (!%p10_p5) target bundleno = 2 (0x2), region = 73 }

// kernel: mymodel_forward.3
= control target key start
LH: loop header
LB: loop body
LE: loop exit
PB: predicated region body
PF: predicated region fallthrough
CT: control target
= control target key end

     0   :  { %s853_s9 = smov 0   ;;  %s1424_s0 = inlined_call_operand.vmem [shape: f32[256,384], index: 0, kind: input, shape index: {}]   ;;  %s1425_s1 = inlined_call_operand.vmem [shape: f32[384,256], index: 1, kind: input, shape index: {}]   ;;  %s1426_s2 = inlined_call_operand.vmem [shape: f32[256,256], index: 2, kind: output, shape index: {}]  }
   0x1 LB: > { %s776_s10 = sadd.s32 4294967295, %s836_s9   ;;  %p780_p0 = scmp.ge.s32.totalorder %s836_s9, 1  ;;  %s836_s9 = sphi %s853_s9, %s12_s9  }
   0x2   : > { %p114_p1 = scmp.lt.s32.totalorder %s836_s9, 3 }
   0x4   : > { %p115_p2 = pnand %p780_p0, %p114_p1 }
   0x5   : > { %s781_s13 = sshll.u32 (!%p115_p2), %s776_s10, 4 }
   0x6   : > { %118 = sbr.rel (%p115_p2) target bundleno = 365 (0x16d), region = 28  ;;  %p139_p3 = scmp.lt.s32.totalorder (!%p115_p2), %s781_s13, 31 }
   0xb   : > { %v230_v0 = vld [vmem:[%s1425_s1 + $0xf0] sm:$0xff]  ;;  %v228_v2 = vld [vmem:[%s1425_s1 + $0xe0] sm:$0xff]  ;;  %s1428_s13 = smov (!%p139_p3, %s781_s13), 31  ;;  %v231_v34 = vld [vmem:[%s1425_s1 + $0xf8] sm:$0xff] }
   0xc   : > { %v262_v1 = vld [vmem:[%s1425_s1 + $0x1f0] sm:$0xff]  ;;  %789 = vmatpush.msra.mxu2 %v230_v0  ;;  %v260_v3 = vld [vmem:[%s1425_s1 + $0x1e0] sm:$0xff]  ;;  %296 = vmatpush.msra.mxu0 %v230_v0  ;;  %s821_s11 = smul.u32 24, %s1428_s13  ;;  %v229_v36 = vld [vmem:[%s1425_s1 + $0xe8] sm:$0xff]  ;;  %s788_s30 = sshll.u32 %s1428_s13, 4 }
   0xd   : > { %805 = vmatpush.msra.mxu3 %v262_v1  ;;  %v226_v4 = vld [vmem:[%s1425_s1 + $0xd0] sm:$0xff]  ;;  %361 = vmatpush.msra.mxu1 %v262_v1  ;;  %v224_v6 = vld [vmem:[%s1425_s1 + $0xc0] sm:$0xff]  ;;  %v263_v40 = vld [vmem:[%s1425_s1 + $0x1f8] sm:$0xff]  ;;  %s1365_s4 = scalar_lea.vmem %s1426_s2, %s788_s30 }
   0xe   : > { %v258_v5 = vld [vmem:[%s1425_s1 + $0x1d0] sm:$0xff]  ;;  %790 = vmatpush.msra.mxu2 %v228_v2  ;;  %v256_v7 = vld [vmem:[%s1425_s1 + $0x1c0] sm:$0xff]  ;;  %297 = vmatpush.msra.mxu0 %v228_v2  ;;  %s959_s22 = scalar_lea.vmem %s1424_s0, %s821_s11  ;;  %v227_v41 = vld [vmem:[%s1425_s1 + $0xd8] sm:$0xff] }
   0xf   : > { %806 = vmatpush.msra.mxu3 %v260_v3  ;;  %362 = vmatpush.msra.mxu1 %v260_v3  ;;  %v222_v8 = vld [vmem:[%s1425_s1 + $0xb0] sm:$0xff]  ;;  %v220_v10 = vld [vmem:[%s1425_s1 + $0xa0] sm:$0xff]  ;;  %v971_v33 = vld [vmem:[%s959_s22 + $0xc8] sm:$0xff] }
  0x10   : > { %791 = vmatpush.msra.mxu2 %v226_v4  ;;  %v254_v9 = vld [vmem:[%s1425_s1 + $0x1b0] sm:$0xff]  ;;  %298 = vmatpush.msra.mxu0 %v226_v4  ;;  %v252_v11 = vld [vmem:[%s1425_s1 + $0x1a0] sm:$0xff]  ;;  %v988_v38 = vld [vmem:[%s959_s22 + $0x8] sm:$0xff] }
  0x11   : > { %807 = vmatpush.msra.mxu3 %v258_v5  ;;  %363 = vmatpush.msra.mxu1 %v258_v5  ;;  %v218_v12 = vld [vmem:[%s1425_s1 + $0x90] sm:$0xff]  ;;  %v216_v14 = vld [vmem:[%s1425_s1 + $0x80] sm:$0xff]  ;;  %v295_v42 = vld [vmem:[%s1425_s1 + $0x2f8] sm:$0xff] }
  0x12   : > { %792 = vmatpush.msra.mxu2 %v224_v6  ;;  %299 = vmatpush.msra.mxu0 %v224_v6  ;;  %v250_v13 = vld [vmem:[%s1425_s1 + $0x190] sm:$0xff]  ;;  %v248_v15 = vld [vmem:[%s1425_s1 + $0x180] sm:$0xff]  ;;  %v261_v44 = vld [vmem:[%s1425_s1 + $0x1e8] sm:$0xff] }
  0x13   : > { %808 = vmatpush.msra.mxu3 %v256_v7  ;;  %364 = vmatpush.msra.mxu1 %v256_v7  ;;  %v214_v16 = vld [vmem:[%s1425_s1 + $0x70] sm:$0xff]  ;;  %v212_v18 = vld [vmem:[%s1425_s1 + $0x60] sm:$0xff]  ;;  %v225_v45 = vld [vmem:[%s1425_s1 + $0xc8] sm:$0xff] }
  0x14   : > { %793 = vmatpush.msra.mxu2 %v222_v8  ;;  %300 = vmatpush.msra.mxu0 %v222_v8  ;;  %v246_v17 = vld [vmem:[%s1425_s1 + $0x170] sm:$0xff]  ;;  %v244_v19 = vld [vmem:[%s1425_s1 + $0x160] sm:$0xff]  ;;  %v1014_v46 = vld [vmem:[%s959_s22 + $0xd8] sm:$0xff] }
  0x15   : > { %809 = vmatpush.msra.mxu3 %v254_v9  ;;  %365 = vmatpush.msra.mxu1 %v254_v9  ;;  %v210_v20 = vld [vmem:[%s1425_s1 + $0x50] sm:$0xff]  ;;  %v208_v22 = vld [vmem:[%s1425_s1 + $0x40] sm:$0xff]  ;;  %v293_v48 = vld [vmem:[%s1425_s1 + $0x2e8] sm:$0xff] }
  0x16   : > { %794 = vmatpush.msra.mxu2 %v220_v10  ;;  %301 = vmatpush.msra.mxu0 %v220_v10  ;;  %v242_v21 = vld [vmem:[%s1425_s1 + $0x150] sm:$0xff]  ;;  %v240_v23 = vld [vmem:[%s1425_s1 + $0x140] sm:$0xff]  ;;  %v259_v50 = vld [vmem:[%s1425_s1 + $0x1d8] sm:$0xff] }
  0x17   : > { %810 = vmatpush.msra.mxu3 %v252_v11  ;;  %366 = vmatpush.msra.mxu1 %v252_v11  ;;  %v206_v24 = vld [vmem:[%s1425_s1 + $0x30] sm:$0xff]  ;;  %v204_v26 = vld [vmem:[%s1425_s1 + $0x20] sm:$0xff]  ;;  %v223_v51 = vld [vmem:[%s1425_s1 + $0xb8] sm:$0xff] }
  0x18   : > { %795 = vmatpush.msra.mxu2 %v218_v12  ;;  %302 = vmatpush.msra.mxu0 %v218_v12  ;;  %v238_v25 = vld [vmem:[%s1425_s1 + $0x130] sm:$0xff]  ;;  %v236_v27 = vld [vmem:[%s1425_s1 + $0x120] sm:$0xff]  ;;  %v1034_v52 = vld [vmem:[%s959_s22 + $0x18] sm:$0xff] }
  0x19   : > { %811 = vmatpush.msra.mxu3 %v250_v13  ;;  %367 = vmatpush.msra.mxu1 %v250_v13  ;;  %v202_v28 = vld [vmem:[%s1425_s1 + $0x10] sm:$0xff]  ;;  %v200_v30 = vld [vmem:[%s1425_s1] sm:$0xff]  ;;  %v291_v53 = vld [vmem:[%s1425_s1 + $0x2d8] sm:$0xff] }
  0x1a   : > { %796 = vmatpush.msra.mxu2 %v216_v14  ;;  %303 = vmatpush.msra.mxu0 %v216_v14  ;;  %v234_v29 = vld [vmem:[%s1425_s1 + $0x110] sm:$0xff]  ;;  %v232_v31 = vld [vmem:[%s1425_s1 + $0x100] sm:$0xff]  ;;  %v257_v56 = vld [vmem:[%s1425_s1 + $0x1c8] sm:$0xff] }
  0x1b   : > { %812 = vmatpush.msra.mxu3 %v248_v15  ;;  %368 = vmatpush.msra.mxu1 %v248_v15  ;;  %v968_v32 = vld [vmem:[%s959_s22 + $0xc0] sm:$0xff]  ;;  %v294_v35 = vld [vmem:[%s1425_s1 + $0x2f0] sm:$0xff]  ;;  %v221_v57 = vld [vmem:[%s1425_s1 + $0xa8] sm:$0xff] }
  0x1c   : > { %797 = vmatpush.msra.mxu2 %v214_v16  ;;  %304 = vmatpush.msra.mxu0 %v214_v16  ;;  %v985_v37 = vld [vmem:[%s959_s22] sm:$0xff]  ;;  %v290_v43 = vld [vmem:[%s1425_s1 + $0x2d0] sm:$0xff]  ;;  %v289_v58 = vld [vmem:[%s1425_s1 + $0x2c8] sm:$0xff] }
  0x1d   : > { %813 = vmatpush.msra.mxu3 %v246_v17  ;;  %369 = vmatpush.msra.mxu1 %v246_v17  ;;  %v292_v39 = vld [vmem:[%s1425_s1 + $0x2e0] sm:$0xff]  ;;  %v286_v55 = vld [vmem:[%s1425_s1 + $0x2b0] sm:$0xff]  ;;  %v255_v60 = vld [vmem:[%s1425_s1 + $0x1b8] sm:$0xff] }
  0x1e   : > { %798 = vmatpush.msra.mxu2 %v212_v18  ;;  %305 = vmatpush.msra.mxu0 %v212_v18  ;;  %v1017_v47 = vld [vmem:[%s959_s22 + $0xe0] sm:$0xff]  ;;  %v219_v61 = vld [vmem:[%s1425_s1 + $0x98] sm:$0xff]  ;;  %v1066_v62 = vld [vmem:[%s959_s22 + $0xf0] sm:$0xff] }
  0x1f   : > { %814 = vmatpush.msra.mxu3 %v244_v19  ;;  %370 = vmatpush.msra.mxu1 %v244_v19  ;;  %v288_v49 = vld [vmem:[%s1425_s1 + $0x2c0] sm:$0xff]  ;;  %v1069_v63 = vld [vmem:[%s959_s22 + $0xf8] sm:$0xff]  ;;  %v282_v1 = vld [vmem:[%s1425_s1 + $0x290] sm:$0xff] }
  0x20   : > { %799 = vmatpush.msra.mxu2 %v210_v20  ;;  %306 = vmatpush.msra.mxu0 %v210_v20  ;;  %v1040_v54 = vld [vmem:[%s959_s22 + $0x20] sm:$0xff]  ;;  %v287_v0 = vld [vmem:[%s1425_s1 + $0x2b8] sm:$0xff]  ;;  %v253_v2 = vld [vmem:[%s1425_s1 + $0x1a8] sm:$0xff] }
  0x21   : > { %815 = vmatpush.msra.mxu3 %v242_v21  ;;  %371 = vmatpush.msra.mxu1 %v242_v21  ;;  %v284_v59 = vld [vmem:[%s1425_s1 + $0x2a0] sm:$0xff]  ;;  %v217_v3 = vld [vmem:[%s1425_s1 + $0x88] sm:$0xff]  ;;  %v1086_v4 = vld [vmem:[%s959_s22 + $0x30] sm:$0xff] }
  0x22   : > { %800 = vmatpush.msra.mxu2 %v208_v22  ;;  %307 = vmatpush.msra.mxu0 %v208_v22  ;;  %v285_v5 = vld [vmem:[%s1425_s1 + $0x2a8] sm:$0xff]  ;;  %v1092_v6 = vld [vmem:[%s959_s22 + $0x38] sm:$0xff]  ;;  %v280_v7 = vld [vmem:[%s1425_s1 + $0x280] sm:$0xff] }
  0x23   : > { %816 = vmatpush.msra.mxu3 %v240_v23  ;;  %372 = vmatpush.msra.mxu1 %v240_v23  ;;  %v251_v8 = vld [vmem:[%s1425_s1 + $0x198] sm:$0xff]  ;;  %v278_v11 = vld [vmem:[%s1425_s1 + $0x270] sm:$0xff]  ;;  %v249_v12 = vld [vmem:[%s1425_s1 + $0x188] sm:$0xff] }
  0x24   : > { %801 = vmatpush.msra.mxu2 %v206_v24  ;;  %308 = vmatpush.msra.mxu0 %v206_v24  ;;  %v215_v9 = vld [vmem:[%s1425_s1 + $0x78] sm:$0xff]  ;;  %v213_v13 = vld [vmem:[%s1425_s1 + $0x68] sm:$0xff]  ;;  %v1121_v15 = vld [vmem:[%s959_s22 + $0x110] sm:$0xff] }
  0x25   : > { %817 = vmatpush.msra.mxu3 %v238_v25  ;;  %373 = vmatpush.msra.mxu1 %v238_v25  ;;  %v283_v10 = vld [vmem:[%s1425_s1 + $0x298] sm:$0xff]  ;;  %v1118_v14 = vld [vmem:[%s959_s22 + $0x108] sm:$0xff]  ;;  %v276_v17 = vld [vmem:[%s1425_s1 + $0x260] sm:$0xff] }
  0x26   : > { %802 = vmatpush.msra.mxu2 %v204_v26  ;;  %309 = vmatpush.msra.mxu0 %v204_v26  ;;  %v281_v16 = vld [vmem:[%s1425_s1 + $0x288] sm:$0xff]  ;;  %v247_v18 = vld [vmem:[%s1425_s1 + $0x178] sm:$0xff]  ;;  %v1144_v22 = vld [vmem:[%s959_s22 + $0x50] sm:$0xff] }
  0x27   : > { %818 = vmatpush.msra.mxu3 %v236_v27  ;;  %374 = vmatpush.msra.mxu1 %v236_v27  ;;  %v211_v19 = vld [vmem:[%s1425_s1 + $0x58] sm:$0xff]  ;;  %v1138_v20 = vld [vmem:[%s959_s22 + $0x48] sm:$0xff]  ;;  %v274_v23 = vld [vmem:[%s1425_s1 + $0x250] sm:$0xff] }
  0x28   : > { %803 = vmatpush.msra.mxu2 %v202_v28  ;;  %310 = vmatpush.msra.mxu0 %v202_v28  ;;  %v279_v21 = vld [vmem:[%s1425_s1 + $0x278] sm:$0xff]  ;;  %v245_v24 = vld [vmem:[%s1425_s1 + $0x168] sm:$0xff]  ;;  %v272_v27 = vld [vmem:[%s1425_s1 + $0x240] sm:$0xff] }
  0x29   : > { %819 = vmatpush.msra.mxu3 %v234_v29  ;;  %375 = vmatpush.msra.mxu1 %v234_v29  ;;  %v209_v25 = vld [vmem:[%s1425_s1 + $0x48] sm:$0xff]  ;;  %v243_v28 = vld [vmem:[%s1425_s1 + $0x158] sm:$0xff] }
  0x2a   : > { %804 = vmatpush.msra.mxu2 %v200_v30  ;;  %311 = vmatpush.msra.mxu0 %v200_v30  ;;  %v277_v26 = vld [vmem:[%s1425_s1 + $0x268] sm:$0xff]  ;;  %v207_v29 = vld [vmem:[%s1425_s1 + $0x38] sm:$0xff]  ;;  %v1170_v30 = vld [vmem:[%s959_s22 + $0x120] sm:$0xff] }
  0x2b   : > { %820 = vmatpush.msra.mxu3 %v232_v31  ;;  %336 = vmatmul.f32.vlgmr.msra.gmra.mxu2 %v968_v32 }
  0x2c   : > { %401 = vmatmul.f32.vlgmr.msra.gmra.mxu3 %v971_v33  ;;  %426 = vmatpush.msrb.mxu2 %v294_v35  ;;  %v270_v35 = vld [vmem:[%s1425_s1 + $0x230] sm:$0xff] }
  0x2d   : > { %491 = vmatpush.msrb.mxu3 %v231_v34  ;;  %376 = vmatpush.msra.mxu1 %v232_v31  ;;  %v1173_v31 = vld [vmem:[%s959_s22 + $0x128] sm:$0xff]  ;;  %v275_v34 = vld [vmem:[%s1425_s1 + $0x258] sm:$0xff] }
  0x2e   : > { %312 = vmatmul.f32.vlgmr.msra.gmra.mxu0 %v985_v37  ;;  %377 = vmatmul.f32.vlgmr.msra.gmra.mxu1 %v988_v38 }
  0x2f   : > { %492 = vmatpush.msrb.mxu3 %v229_v36  ;;  %427 = vmatpush.msrb.mxu2 %v292_v39  ;;  %v241_v36 = vld [vmem:[%s1425_s1 + $0x148] sm:$0xff] }
  0x30   : > { %556 = vmatpush.msrb.mxu0 %v263_v40  ;;  %621 = vmatpush.msrb.mxu1 %v295_v42  ;;  %v205_v39 = vld [vmem:[%s1425_s1 + $0x28] sm:$0xff]  ;;  %v1190_v40 = vld [vmem:[%s959_s22 + $0x60] sm:$0xff] }
  0x31   : > { %493 = vmatpush.msrb.mxu3 %v227_v41  ;;  %428 = vmatpush.msrb.mxu2 %v290_v43  ;;  %v273_v41 = vld [vmem:[%s1425_s1 + $0x248] sm:$0xff]  ;;  %v268_v43 = vld [vmem:[%s1425_s1 + $0x220] sm:$0xff] }
  0x32   : > { %557 = vmatpush.msrb.mxu0 %v261_v44  ;;  %622 = vmatpush.msrb.mxu1 %v293_v48  ;;  %v1196_v42 = vld [vmem:[%s959_s22 + $0x68] sm:$0xff]  ;;  %v239_v44 = vld [vmem:[%s1425_s1 + $0x138] sm:$0xff] }
  0x33   : > { %494 = vmatpush.msrb.mxu3 %v225_v45  ;;  %339 = vmatmul.f32.gmra.mxu2 %v1014_v46  ;;  %v203_v45 = vld [vmem:[%s1425_s1 + $0x18] sm:$0xff] }
  0x34   : > { %404 = vmatmul.f32.gmra.mxu3 %v1017_v47  ;;  %429 = vmatpush.msrb.mxu2 %v288_v49  ;;  %v271_v48 = vld [vmem:[%s1425_s1 + $0x238] sm:$0xff]  ;;  %v266_v49 = vld [vmem:[%s1425_s1 + $0x210] sm:$0xff] }
  0x35   : > { %558 = vmatpush.msrb.mxu0 %v259_v50  ;;  %495 = vmatpush.msrb.mxu3 %v223_v51  ;;  %v237_v50 = vld [vmem:[%s1425_s1 + $0x128] sm:$0xff] }
  0x36   : > { %315 = vmatmul.f32.gmra.mxu0 %v1034_v52  ;;  %623 = vmatpush.msrb.mxu1 %v291_v53  ;;  %v201_v51 = vld [vmem:[%s1425_s1 + $0x8] sm:$0xff]  ;;  %v1222_v53 = vld [vmem:[%s959_s22 + $0x138] sm:$0xff] }
  0x37   : > { %380 = vmatmul.f32.gmra.mxu1 %v1040_v54  ;;  %430 = vmatpush.msrb.mxu2 %v286_v55  ;;  %v1225_v55 = vld [vmem:[%s959_s22 + $0x140] sm:$0xff] }
  0x38   : > { %559 = vmatpush.msrb.mxu0 %v257_v56  ;;  %496 = vmatpush.msrb.mxu3 %v221_v57  ;;  %v269_v56 = vld [vmem:[%s1425_s1 + $0x228] sm:$0xff]  ;;  %v264_v57 = vld [vmem:[%s1425_s1 + $0x200] sm:$0xff] }
  0x39   : > { %624 = vmatpush.msrb.mxu1 %v289_v58  ;;  %431 = vmatpush.msrb.mxu2 %v284_v59  ;;  %v235_v58 = vld [vmem:[%s1425_s1 + $0x118] sm:$0xff] }
  0x3a   : > { %560 = vmatpush.msrb.mxu0 %v255_v60  ;;  %497 = vmatpush.msrb.mxu3 %v219_v61  ;;  %v167_v59 = vld [vmem:[%s959_s22 + $0x78] sm:$0xff]  ;;  %v168_v61 = vld [vmem:[%s959_s22 + $0x80] sm:$0xff] }
  0x3b   : > { %342 = vmatmul.f32.gmra.mxu2 %v1066_v62  ;;  %625 = vmatpush.msrb.mxu1 %v287_v0  ;;  %v267_v60 = vld [vmem:[%s1425_s1 + $0x218] sm:$0xff]  ;;  %v233_v0 = vld [vmem:[%s1425_s1 + $0x108] sm:$0xff] }
  0x3c   : > { %407 = vmatmul.f32.gmra.mxu3 %v1069_v63  ;;  %432 = vmatpush.msrb.mxu2 %v282_v1  ;;  %v265_v1 = vld [vmem:[%s1425_s1 + $0x208] sm:$0xff] }
  0x3d   : > { %561 = vmatpush.msrb.mxu0 %v253_v2  ;;  %498 = vmatpush.msrb.mxu3 %v217_v3  ;;  %v1250_v2 = vld [vmem:[%s959_s22 + $0x150] sm:$0xff]  ;;  %v1253_v3 = vld [vmem:[%s959_s22 + $0x158] sm:$0xff] }
  0x3e   : > { %318 = vmatmul.f32.gmra.mxu0 %v1086_v4  ;;  %626 = vmatpush.msrb.mxu1 %v285_v5  ;;  %v170_v5 = vld [vmem:[%s959_s22 + $0x90] sm:$0xff] }
  0x3f   : > { %383 = vmatmul.f32.gmra.mxu1 %v1092_v6  ;;  %433 = vmatpush.msrb.mxu2 %v280_v7  ;;  %v171_v7 = vld [vmem:[%s959_s22 + $0x98] sm:$0xff] }
  0x40   : > { %562 = vmatpush.msrb.mxu0 %v251_v8  ;;  %499 = vmatpush.msrb.mxu3 %v215_v9  ;;  %v1260_v8 = vld [vmem:[%s959_s22 + $0x168] sm:$0xff]  ;;  %v1263_v9 = vld [vmem:[%s959_s22 + $0x170] sm:$0xff] }
  0x41   : > { %627 = vmatpush.msrb.mxu1 %v283_v10  ;;  %434 = vmatpush.msrb.mxu2 %v278_v11  ;;  %v173_v10 = vld [vmem:[%s959_s22 + $0xa8] sm:$0xff]  ;;  %v174_v11 = vld [vmem:[%s959_s22 + $0xb0] sm:$0xff] }
  0x42   : > { %563 = vmatpush.msrb.mxu0 %v249_v12  ;;  %500 = vmatpush.msrb.mxu3 %v213_v13  ;;  %v154_v12 = vld [vmem:[%s959_s22 + $0x10] sm:$0xff]  ;;  %v157_v13 = vld [vmem:[%s959_s22 + $0x28] sm:$0xff] }
  0x43   : > { %345 = vmatmul.f32.gmra.mxu2 %v1118_v14  ;;  %628 = vmatpush.msrb.mxu1 %v281_v16  ;;  %v160_v16 = vld [vmem:[%s959_s22 + $0x40] sm:$0xff] }
  0x44   : > { %410 = vmatmul.f32.gmra.mxu3 %v1121_v15  ;;  %435 = vmatpush.msrb.mxu2 %v276_v17 }
  0x45   : > { %564 = vmatpush.msrb.mxu0 %v247_v18  ;;  %501 = vmatpush.msrb.mxu3 %v211_v19 }
  0x46   : > { %321 = vmatmul.f32.gmra.mxu0 %v1138_v20  ;;  %629 = vmatpush.msrb.mxu1 %v279_v21 }
  0x47   : > { %386 = vmatmul.f32.gmra.mxu1 %v1144_v22  ;;  %436 = vmatpush.msrb.mxu2 %v274_v23 }
  0x48   : > { %565 = vmatpush.msrb.mxu0 %v245_v24  ;;  %502 = vmatpush.msrb.mxu3 %v209_v25 }
  0x49   : > { %630 = vmatpush.msrb.mxu1 %v277_v26  ;;  %437 = vmatpush.msrb.mxu2 %v272_v27 }
  0x4a   : > { %566 = vmatpush.msrb.mxu0 %v243_v28  ;;  %503 = vmatpush.msrb.mxu3 %v207_v29 }
  0x4b   : > { %348 = vmatmul.f32.gmra.mxu2 %v1170_v30  ;;  %631 = vmatpush.msrb.mxu1 %v275_v34 }
  0x4c   : > { %413 = vmatmul.f32.gmra.mxu3 %v1173_v31  ;;  %438 = vmatpush.msrb.mxu2 %v270_v35 }
  0x4d   : > { %567 = vmatpush.msrb.mxu0 %v241_v36  ;;  %504 = vmatpush.msrb.mxu3 %v205_v39 }
  0x4e   : > { %324 = vmatmul.f32.gmra.mxu0 %v1190_v40  ;;  %632 = vmatpush.msrb.mxu1 %v273_v41 }
  0x4f   : > { %389 = vmatmul.f32.gmra.mxu1 %v1196_v42  ;;  %439 = vmatpush.msrb.mxu2 %v268_v43 }
  0x50   : > { %568 = vmatpush.msrb.mxu0 %v239_v44  ;;  %505 = vmatpush.msrb.mxu3 %v203_v45 }
  0x51   : > { %633 = vmatpush.msrb.mxu1 %v271_v48  ;;  %440 = vmatpush.msrb.mxu2 %v266_v49 }
  0x52   : > { %569 = vmatpush.msrb.mxu0 %v237_v50  ;;  %506 = vmatpush.msrb.mxu3 %v201_v51 }
  0x53   : > { %351 = vmatmul.f32.gmra.mxu2 %v1222_v53  ;;  %634 = vmatpush.msrb.mxu1 %v269_v56 }
  0x54   : > { %416 = vmatmul.f32.gmra.mxu3 %v1225_v55  ;;  %441 = vmatpush.msrb.mxu2 %v264_v57 }
  0x55   : > { %570 = vmatpush.msrb.mxu0 %v235_v58  ;;  %635 = vmatpush.msrb.mxu1 %v267_v60 }
  0x56   : > { %327 = vmatmul.f32.gmra.mxu0 %v167_v59 }
  0x57   : > { %392 = vmatmul.f32.gmra.mxu1 %v168_v61  ;;  %571 = vmatpush.msrb.mxu0 %v233_v0 }
  0x58   : > { %636 = vmatpush.msrb.mxu1 %v265_v1 }
  0x5b   : > { %354 = vmatmul.f32.gmra.mxu2 %v1250_v2 }
  0x5c   : > { %419 = vmatmul.f32.gmra.mxu3 %v1253_v3 }
  0x5e   : > { %330 = vmatmul.f32.gmra.mxu0 %v170_v5 }
  0x5f   : > { %395 = vmatmul.f32.gmra.mxu1 %v171_v7 }
  0x63   : > { %357 = vmatmul.f32.gmra.mxu2 %v1260_v8 }
  0x64   : > { %422 = vmatmul.f32.gmra.mxu3 %v1263_v9 }
  0x66   : > { %333 = vmatmul.f32.gmra.mxu0 %v173_v10 }
  0x67   : > { %398 = vmatmul.f32.gmra.mxu1 %v174_v11 }
  0x6b   : > { %442 = vmatmul.f32.vlgmr.msrb.gmra.mxu2 %v154_v12 }
  0x6c   : > { %507 = vmatmul.f32.vlgmr.msrb.gmra.mxu3 %v985_v37  ;;  %v163_v37 = vld [vmem:[%s959_s22 + $0x58] sm:$0xff] }
  0x6e   : > { %572 = vmatmul.f32.vlgmr.msrb.gmra.mxu0 %v988_v38  ;;  %v166_v38 = vld [vmem:[%s959_s22 + $0x70] sm:$0xff] }
  0x6f   : > { %637 = vmatmul.f32.vlgmr.msrb.gmra.mxu1 %v154_v12 }
  0x73   : > { %445 = vmatmul.f32.gmra.mxu2 %v157_v13 }
  0x74   : > { %510 = vmatmul.f32.gmra.mxu3 %v1034_v52  ;;  %v169_v52 = vld [vmem:[%s959_s22 + $0x88] sm:$0xff] }
  0x76   : > { %575 = vmatmul.f32.gmra.mxu0 %v1040_v54  ;;  %v172_v54 = vld [vmem:[%s959_s22 + $0xa0] sm:$0xff] }
  0x77   : > { %640 = vmatmul.f32.gmra.mxu1 %v157_v13 }
  0x7b   : > { %448 = vmatmul.f32.gmra.mxu2 %v160_v16 }
  0x7c   : > { %513 = vmatmul.f32.gmra.mxu3 %v1086_v4  ;;  %v175_v4 = vld [vmem:[%s959_s22 + $0xb8] sm:$0xff] }
  0x7e   : > { %578 = vmatmul.f32.gmra.mxu0 %v1092_v6  ;;  %v178_v6 = vld [vmem:[%s959_s22 + $0xd0] sm:$0xff] }
  0x7f   : > { %643 = vmatmul.f32.gmra.mxu1 %v160_v16 }
  0x83   : > { %451 = vmatmul.f32.gmra.mxu2 %v163_v37 }
  0x84   : > { %516 = vmatmul.f32.gmra.mxu3 %v1138_v20 }
  0x86   : > { %581 = vmatmul.f32.gmra.mxu0 %v1144_v22  ;;  %v181_v22 = vld [vmem:[%s959_s22 + $0xe8] sm:$0xff] }
  0x87   : > { %646 = vmatmul.f32.gmra.mxu1 %v163_v37 }
  0x8b   : > { %454 = vmatmul.f32.gmra.mxu2 %v166_v38 }
  0x8c   : > { %519 = vmatmul.f32.gmra.mxu3 %v1190_v40 }
  0x8e   : > { %584 = vmatmul.f32.gmra.mxu0 %v1196_v42 }
  0x8f   : > { %649 = vmatmul.f32.gmra.mxu1 %v166_v38 }
  0x93   : > { %457 = vmatmul.f32.gmra.mxu2 %v169_v52 }
  0x94   : > { %522 = vmatmul.f32.gmra.mxu3 %v167_v59 }
  0x96   : > { %587 = vmatmul.f32.gmra.mxu0 %v168_v61 }
  0x97   : > { %652 = vmatmul.f32.gmra.mxu1 %v169_v52 }
  0x9b   : > { %460 = vmatmul.f32.gmra.mxu2 %v172_v54 }
  0x9c   : > { %525 = vmatmul.f32.gmra.mxu3 %v170_v5 }
  0x9e   : > { %590 = vmatmul.f32.gmra.mxu0 %v171_v7 }
  0x9f   : > { %655 = vmatmul.f32.gmra.mxu1 %v172_v54 }
  0xa3   : > { %463 = vmatmul.f32.gmra.mxu2 %v175_v4 }
  0xa4   : > { %528 = vmatmul.f32.gmra.mxu3 %v173_v10 }
  0xa6   : > { %593 = vmatmul.f32.gmra.mxu0 %v174_v11 }
  0xa7   : > { %658 = vmatmul.f32.gmra.mxu1 %v175_v4 }
  0xab   : > { %466 = vmatmul.f32.gmra.mxu2 %v178_v6  ;;  %v1289_v17 = vpop.f32.mrf.mxu0  ;;  %v1291_v18 = vpop.f32.mrf.mxu1 }
  0xac   : > { %531 = vmatmul.f32.gmra.mxu3 %v968_v32  ;;  %v379_v5 = vadd.f32 %v1291_v18, %v1289_v17 }
  0xae   : > { %v337_v19 = vpop.f32.mrf.mxu2  ;;  %596 = vmatmul.f32.gmra.mxu0 %v971_v33  ;;  %v184_v33 = vld [vmem:[%s959_s22 + $0x100] sm:$0xff] }
  0xaf   : > { %v402_v20 = vpop.f32.mrf.mxu3  ;;  %661 = vmatmul.f32.gmra.mxu1 %v178_v6 }
  0xb0   : > { %v1294_v21 = vadd.f32 %v402_v20, %v337_v19 }
  0xb3   : > { %469 = vmatmul.f32.gmra.mxu2 %v181_v22  ;;  %v1298_v23 = vpop.f32.mrf.mxu0 }
  0xb4   : > { %534 = vmatmul.f32.gmra.mxu3 %v1014_v46  ;;  %v1300_v24 = vpop.f32.mrf.mxu1 }
  0xb5   : > { %v382_v16 = vadd.f32 %v1300_v24, %v1298_v23 }
  0xb6   : > { %v340_v32 = vpop.f32.mrf.mxu2  ;;  %599 = vmatmul.f32.gmra.mxu0 %v1017_v47  ;;  %v187_v47 = vld [vmem:[%s959_s22 + $0x118] sm:$0xff] }
  0xb7   : > { %v405_v25 = vpop.f32.mrf.mxu3  ;;  %664 = vmatmul.f32.gmra.mxu1 %v181_v22 }
  0xb8   : > { %v1303_v26 = vadd.f32 %v405_v25, %v340_v32 }
  0xbb   : > { %472 = vmatmul.f32.gmra.mxu2 %v184_v33  ;;  %v1307_v27 = vpop.f32.mrf.mxu0 }
  0xbc   : > { %537 = vmatmul.f32.gmra.mxu3 %v1066_v62  ;;  %v1309_v28 = vpop.f32.mrf.mxu1 }
  0xbd   : > { %v385_v18 = vadd.f32 %v1309_v28, %v1307_v27 }
  0xbe   : > { %v343_v46 = vpop.f32.mrf.mxu2  ;;  %602 = vmatmul.f32.gmra.mxu0 %v1069_v63  ;;  %v190_v63 = vld [vmem:[%s959_s22 + $0x130] sm:$0xff] }
  0xbf   : > { %v408_v29 = vpop.f32.mrf.mxu3  ;;  %667 = vmatmul.f32.gmra.mxu1 %v184_v33 }
  0xc0   : > { %v1312_v34 = vadd.f32 %v408_v29, %v343_v46 }
  0xc3   : > { %475 = vmatmul.f32.gmra.mxu2 %v187_v47  ;;  %v1316_v35 = vpop.f32.mrf.mxu0 }
  0xc4   : > { %540 = vmatmul.f32.gmra.mxu3 %v1118_v14  ;;  %v1318_v36 = vpop.f32.mrf.mxu1 }
  0xc5   : > { %v388_v33 = vadd.f32 %v1318_v36, %v1316_v35 }
  0xc6   : > { %v346_v62 = vpop.f32.mrf.mxu2  ;;  %605 = vmatmul.f32.gmra.mxu0 %v1121_v15  ;;  %v193_v15 = vld [vmem:[%s959_s22 + $0x148] sm:$0xff] }
  0xc7   : > { %v411_v39 = vpop.f32.mrf.mxu3  ;;  %670 = vmatmul.f32.gmra.mxu1 %v187_v47 }
  0xc8   : > { %v1321_v40 = vadd.f32 %v411_v39, %v346_v62 }
  0xcb   : > { %478 = vmatmul.f32.gmra.mxu2 %v190_v63  ;;  %v1325_v41 = vpop.f32.mrf.mxu0 }
  0xcc   : > { %543 = vmatmul.f32.gmra.mxu3 %v1170_v30  ;;  %v1327_v42 = vpop.f32.mrf.mxu1 }
  0xce   : > { %v349_v14 = vpop.f32.mrf.mxu2  ;;  %608 = vmatmul.f32.gmra.mxu0 %v1173_v31  ;;  %v196_v31 = vld [vmem:[%s959_s22 + $0x160] sm:$0xff] }
  0xcf   : > { %v414_v43 = vpop.f32.mrf.mxu3  ;;  %673 = vmatmul.f32.gmra.mxu1 %v190_v63  ;;  %v391_v63 = vadd.f32 %v1327_v42, %v1325_v41 }
  0xd0   : > { %v1330_v44 = vadd.f32 %v414_v43, %v349_v14 }
  0xd3   : > { %481 = vmatmul.f32.gmra.mxu2 %v193_v15  ;;  %v1334_v45 = vpop.f32.mrf.mxu0 }
  0xd4   : > { %546 = vmatmul.f32.gmra.mxu3 %v1222_v53  ;;  %v1336_v48 = vpop.f32.mrf.mxu1 }
  0xd6   : > { %v352_v30 = vpop.f32.mrf.mxu2  ;;  %611 = vmatmul.f32.gmra.mxu0 %v1225_v55  ;;  %v199_v55 = vld [vmem:[%s959_s22 + $0x178] sm:$0xff] }
  0xd7   : > { %v417_v49 = vpop.f32.mrf.mxu3  ;;  %676 = vmatmul.f32.gmra.mxu1 %v193_v15 }
  0xd8   : > { %v1339_v50 = vadd.f32 %v417_v49, %v352_v30 }
  0xdb   : > { %484 = vmatmul.f32.gmra.mxu2 %v196_v31  ;;  %v1343_v51 = vpop.f32.mrf.mxu0 }
  0xdc   : > { %549 = vmatmul.f32.gmra.mxu3 %v1250_v2  ;;  %v1345_v56 = vpop.f32.mrf.mxu1 }
  0xde   : > { %v355_v53 = vpop.f32.mrf.mxu2  ;;  %614 = vmatmul.f32.gmra.mxu0 %v1253_v3 }
  0xdf   : > { %v420_v57 = vpop.f32.mrf.mxu3  ;;  %679 = vmatmul.f32.gmra.mxu1 %v196_v31  ;;  %v394_v31 = vadd.f32 %v1336_v48, %v1334_v45 }
  0xe0   : > { %v1348_v58 = vadd.f32 %v420_v57, %v355_v53 }
  0xe3   : > { %487 = vmatmul.f32.gmra.mxu2 %v199_v55  ;;  %v1352_v59 = vpop.f32.mrf.mxu0 }
  0xe4   : > { %552 = vmatmul.f32.gmra.mxu3 %v1260_v8  ;;  %v1354_v60 = vpop.f32.mrf.mxu1 }
  0xe6   : > { %v358_v61 = vpop.f32.mrf.mxu2  ;;  %617 = vmatmul.f32.gmra.mxu0 %v1263_v9 }
  0xe7   : > { %v423_v0 = vpop.f32.mrf.mxu3  ;;  %682 = vmatmul.f32.gmra.mxu1 %v199_v55 }
  0xe8   : > { %v1357_v1 = vadd.f32 %v423_v0, %v358_v61 }
  0xeb   : > { %v573_v2 = vpop.f32.mrf.mxu0 }
  0xec   : > { %v638_v3 = vpop.f32.mrf.mxu1 }
  0xee   : > { %v443_v7 = vpop.f32.mrf.mxu2 }
  0xef   : > { %v508_v8 = vpop.f32.mrf.mxu3  ;;  %v444_v9 = vadd.f32 %v443_v7, %v379_v5 }
  0xf0   : > { %v574_v10 = vadd.f32 %v573_v2, %v508_v8  ;;  %v397_v2 = vadd.f32 %v1345_v56, %v1343_v51 }
  0xf1   : > { %686 = vst [vmem:[%s1365_s4] sm:$0xff] %v444_v9 }
  0xf2   : > { %v639_v11 = vadd.f32 %v638_v3, %v574_v10  ;;  %v400_v10 = vadd.f32 %v1354_v60, %v1352_v59 }
  0xf3   : > { %v576_v12 = vpop.f32.mrf.mxu0 }
  0xf4   : > { %687 = vst [vmem:[%s1365_s4 + $0x8] sm:$0xff] %v639_v11  ;;  %v641_v13 = vpop.f32.mrf.mxu1 }
  0xf6   : > { %v446_v37 = vpop.f32.mrf.mxu2 }
  0xf7   : > { %v511_v38 = vpop.f32.mrf.mxu3  ;;  %v447_v52 = vadd.f32 %v446_v37, %v382_v16 }
  0xf8   : > { %v577_v54 = vadd.f32 %v576_v12, %v511_v38 }
  0xf9   : > { %688 = vst [vmem:[%s1365_s4 + $0x10] sm:$0xff] %v447_v52 }
  0xfa   : > { %v642_v4 = vadd.f32 %v641_v13, %v577_v54 }
  0xfb   : > { %v579_v6 = vpop.f32.mrf.mxu0 }
  0xfc   : > { %689 = vst [vmem:[%s1365_s4 + $0x18] sm:$0xff] %v642_v4  ;;  %v644_v17 = vpop.f32.mrf.mxu1 }
  0xfe   : > { %v449_v19 = vpop.f32.mrf.mxu2 }
  0xff   : > { %v514_v20 = vpop.f32.mrf.mxu3  ;;  %v450_v22 = vadd.f32 %v449_v19, %v385_v18 }
 0x100   : > { %v580_v32 = vadd.f32 %v579_v6, %v514_v20 }
 0x101   : > { %690 = vst [vmem:[%s1365_s4 + $0x20] sm:$0xff] %v450_v22 }
 0x102   : > { %v645_v23 = vadd.f32 %v644_v17, %v580_v32 }
 0x103   : > { %v582_v24 = vpop.f32.mrf.mxu0 }
 0x104   : > { %691 = vst [vmem:[%s1365_s4 + $0x28] sm:$0xff] %v645_v23  ;;  %v647_v25 = vpop.f32.mrf.mxu1 }
 0x106   : > { %v452_v46 = vpop.f32.mrf.mxu2 }
 0x107   : > { %v517_v29 = vpop.f32.mrf.mxu3  ;;  %v453_v47 = vadd.f32 %v452_v46, %v388_v33 }
 0x108   : > { %v583_v62 = vadd.f32 %v582_v24, %v517_v29 }
 0x109   : > { %692 = vst [vmem:[%s1365_s4 + $0x30] sm:$0xff] %v453_v47 }
 0x10a   : > { %v648_v27 = vadd.f32 %v647_v25, %v583_v62 }
 0x10b   : > { %v585_v28 = vpop.f32.mrf.mxu0 }
 0x10c   : > { %693 = vst [vmem:[%s1365_s4 + $0x38] sm:$0xff] %v648_v27  ;;  %v650_v39 = vpop.f32.mrf.mxu1 }
 0x10e   : > { %v455_v14 = vpop.f32.mrf.mxu2 }
 0x10f   : > { %v520_v43 = vpop.f32.mrf.mxu3  ;;  %v456_v15 = vadd.f32 %v455_v14, %v391_v63 }
 0x110   : > { %v586_v30 = vadd.f32 %v585_v28, %v520_v43 }
 0x111   : > { %694 = vst [vmem:[%s1365_s4 + $0x40] sm:$0xff] %v456_v15 }
 0x112   : > { %v651_v35 = vadd.f32 %v650_v39, %v586_v30 }
 0x113   : > { %v588_v36 = vpop.f32.mrf.mxu0 }
 0x114   : > { %695 = vst [vmem:[%s1365_s4 + $0x48] sm:$0xff] %v651_v35  ;;  %v653_v49 = vpop.f32.mrf.mxu1 }
 0x116   : > { %v458_v53 = vpop.f32.mrf.mxu2 }
 0x117   : > { %v523_v57 = vpop.f32.mrf.mxu3  ;;  %v459_v55 = vadd.f32 %v458_v53, %v394_v31 }
 0x118   : > { %v589_v61 = vadd.f32 %v588_v36, %v523_v57 }
 0x119   : > { %696 = vst [vmem:[%s1365_s4 + $0x50] sm:$0xff] %v459_v55 }
 0x11a   : > { %v654_v41 = vadd.f32 %v653_v49, %v589_v61 }
 0x11b   : > { %v591_v42 = vpop.f32.mrf.mxu0 }
 0x11c   : > { %697 = vst [vmem:[%s1365_s4 + $0x58] sm:$0xff] %v654_v41  ;;  %v656_v0 = vpop.f32.mrf.mxu1 }
 0x11e   : > { %v461_v3 = vpop.f32.mrf.mxu2 }
 0x11f   : > { %v526_v5 = vpop.f32.mrf.mxu3  ;;  %v462_v7 = vadd.f32 %v461_v3, %v397_v2 }
 0x120   : > { %v592_v8 = vadd.f32 %v591_v42, %v526_v5 }
 0x121   : > { %698 = vst [vmem:[%s1365_s4 + $0x60] sm:$0xff] %v462_v7 }
 0x122   : > { %v657_v45 = vadd.f32 %v656_v0, %v592_v8 }
 0x123   : > { %v594_v48 = vpop.f32.mrf.mxu0 }
 0x124   : > { %699 = vst [vmem:[%s1365_s4 + $0x68] sm:$0xff] %v657_v45  ;;  %v659_v9 = vpop.f32.mrf.mxu1 }
 0x126   : > { %v464_v11 = vpop.f32.mrf.mxu2 }
 0x127   : > { %v529_v12 = vpop.f32.mrf.mxu3  ;;  %v465_v13 = vadd.f32 %v464_v11, %v400_v10 }
 0x128   : > { %v595_v16 = vadd.f32 %v594_v48, %v529_v12 }
 0x129   : > { %700 = vst [vmem:[%s1365_s4 + $0x70] sm:$0xff] %v465_v13 }
 0x12a   : > { %v660_v51 = vadd.f32 %v659_v9, %v595_v16 }
 0x12b   : > { %v597_v56 = vpop.f32.mrf.mxu0 }
 0x12c   : > { %701 = vst [vmem:[%s1365_s4 + $0x78] sm:$0xff] %v660_v51  ;;  %v662_v37 = vpop.f32.mrf.mxu1 }
 0x12e   : > { %v467_v38 = vpop.f32.mrf.mxu2 }
 0x12f   : > { %v532_v52 = vpop.f32.mrf.mxu3  ;;  %v468_v54 = vadd.f32 %v467_v38, %v1294_v21 }
 0x130   : > { %v598_v4 = vadd.f32 %v597_v56, %v532_v52 }
 0x131   : > { %702 = vst [vmem:[%s1365_s4 + $0x80] sm:$0xff] %v468_v54 }
 0x132   : > { %v663_v6 = vadd.f32 %v662_v37, %v598_v4 }
 0x133   : > { %v600_v59 = vpop.f32.mrf.mxu0 }
 0x134   : > { %703 = vst [vmem:[%s1365_s4 + $0x88] sm:$0xff] %v663_v6  ;;  %v665_v60 = vpop.f32.mrf.mxu1 }
 0x136   : > { %v470_v17 = vpop.f32.mrf.mxu2 }
 0x137   : > { %v535_v18 = vpop.f32.mrf.mxu3  ;;  %v471_v19 = vadd.f32 %v470_v17, %v1303_v26 }
 0x138   : > { %v601_v20 = vadd.f32 %v600_v59, %v535_v18 }
 0x139   : > { %704 = vst [vmem:[%s1365_s4 + $0x90] sm:$0xff] %v471_v19 }
 0x13a   : > { %v666_v22 = vadd.f32 %v665_v60, %v601_v20 }
 0x13b   : > { %v603_v32 = vpop.f32.mrf.mxu0 }
 0x13c   : > { %705 = vst [vmem:[%s1365_s4 + $0x98] sm:$0xff] %v666_v22  ;;  %v668_v23 = vpop.f32.mrf.mxu1 }
 0x13e   : > { %v473_v21 = vpop.f32.mrf.mxu2 }
 0x13f   : > { %v538_v24 = vpop.f32.mrf.mxu3  ;;  %v474_v25 = vadd.f32 %v473_v21, %v1312_v34 }
 0x140   : > { %v604_v33 = vadd.f32 %v603_v32, %v538_v24 }
 0x141   : > { %706 = vst [vmem:[%s1365_s4 + $0xa0] sm:$0xff] %v474_v25 }
 0x142   : > { %v669_v46 = vadd.f32 %v668_v23, %v604_v33 }
 0x143   : > { %v606_v29 = vpop.f32.mrf.mxu0 }
 0x144   : > { %707 = vst [vmem:[%s1365_s4 + $0xa8] sm:$0xff] %v669_v46  ;;  %v671_v47 = vpop.f32.mrf.mxu1 }
 0x146   : > { %v476_v26 = vpop.f32.mrf.mxu2 }
 0x147   : > { %v541_v62 = vpop.f32.mrf.mxu3  ;;  %v477_v27 = vadd.f32 %v476_v26, %v1321_v40 }
 0x148   : > { %v607_v28 = vadd.f32 %v606_v29, %v541_v62 }
 0x149   : > { %708 = vst [vmem:[%s1365_s4 + $0xb0] sm:$0xff] %v477_v27 }
 0x14a   : > { %v672_v39 = vadd.f32 %v671_v47, %v607_v28 }
 0x14b   : > { %v609_v63 = vpop.f32.mrf.mxu0 }
 0x14c   : > { %709 = vst [vmem:[%s1365_s4 + $0xb8] sm:$0xff] %v672_v39  ;;  %v674_v14 = vpop.f32.mrf.mxu1 }
 0x14e   : > { %v479_v34 = vpop.f32.mrf.mxu2 }
 0x14f   : > { %v544_v43 = vpop.f32.mrf.mxu3  ;;  %v480_v15 = vadd.f32 %v479_v34, %v1330_v44 }
 0x150   : > { %v610_v30 = vadd.f32 %v609_v63, %v544_v43 }
 0x151   : > { %710 = vst [vmem:[%s1365_s4 + $0xc0] sm:$0xff] %v480_v15 }
 0x152   : > { %v675_v35 = vadd.f32 %v674_v14, %v610_v30 }
 0x153   : > { %v612_v36 = vpop.f32.mrf.mxu0 }
 0x154   : > { %711 = vst [vmem:[%s1365_s4 + $0xc8] sm:$0xff] %v675_v35  ;;  %v677_v49 = vpop.f32.mrf.mxu1 }
 0x156   : > { %v482_v40 = vpop.f32.mrf.mxu2 }
 0x157   : > { %v547_v31 = vpop.f32.mrf.mxu3  ;;  %v483_v53 = vadd.f32 %v482_v40, %v1339_v50 }
 0x158   : > { %v613_v57 = vadd.f32 %v612_v36, %v547_v31 }
 0x159   : > { %712 = vst [vmem:[%s1365_s4 + $0xd0] sm:$0xff] %v483_v53 }
 0x15a   : > { %v678_v55 = vadd.f32 %v677_v49, %v613_v57 }
 0x15b   : > { %v615_v61 = vpop.f32.mrf.mxu0 }
 0x15c   : > { %713 = vst [vmem:[%s1365_s4 + $0xd8] sm:$0xff] %v678_v55  ;;  %v680_v41 = vpop.f32.mrf.mxu1 }
 0x15e   : > { %v485_v44 = vpop.f32.mrf.mxu2 }
 0x15f   : > { %v550_v42 = vpop.f32.mrf.mxu3  ;;  %v486_v0 = vadd.f32 %v485_v44, %v1348_v58 }
 0x160   : > { %v616_v2 = vadd.f32 %v615_v61, %v550_v42 }
 0x161   : > { %714 = vst [vmem:[%s1365_s4 + $0xe0] sm:$0xff] %v486_v0 }
 0x162   : > { %v681_v3 = vadd.f32 %v680_v41, %v616_v2 }
 0x163   : > { %v618_v5 = vpop.f32.mrf.mxu0 }
 0x164   : > { %715 = vst [vmem:[%s1365_s4 + $0xe8] sm:$0xff] %v681_v3  ;;  %v683_v7 = vpop.f32.mrf.mxu1 }
 0x166   : > { %v488_v8 = vpop.f32.mrf.mxu2 }
 0x167   : > { %v553_v50 = vpop.f32.mrf.mxu3  ;;  %v489_v45 = vadd.f32 %v488_v8, %v1357_v1 }
 0x168   : > { %v619_v48 = vadd.f32 %v618_v5, %v553_v50 }
 0x169   : > { %716 = vst [vmem:[%s1365_s4 + $0xf0] sm:$0xff] %v489_v45 }
 0x16a   : > { %v684_v9 = vadd.f32 %v683_v7, %v619_v48 }
 0x16c   : > { %717 = vst [vmem:[%s1365_s4 + $0xf8] sm:$0xff] %v684_v9 }
 0x16d PF: > { %s12_s9 = sadd.s32 1, %s836_s9  }
 0x16e   : > { %p9_p4 = scmp.ge.s32.totalorder %s12_s9, 4  }
 0x170   :  { %11 = sbr.rel (!%p9_p4) target bundleno = 1 (0x1), region = 58 }

</bundles_post_ra>
